<compile_context>
chip_gen: v7x
topology: tpu7x:2x2x1
jax: 0.10.0
libtpu: 0.0.40
codegen_flags: <defaults>
</compile_context>

<pallas_src>
import functools

import jax
import jax.numpy as jnp
from jax import lax
from jax.experimental import pallas as pl
from jax.experimental.pallas import tpu as pltpu

LN_EPS = 1e-5


def _layernorm(x, gamma, beta):
    mu = jnp.mean(x, axis=-1, keepdims=True)
    var = jnp.mean((x - mu) ** 2, axis=-1, keepdims=True)
    return (x - mu) * lax.rsqrt(var + LN_EPS) * gamma + beta


def encoder_block_kernel(n_heads, head_dim, ff_chunk, share_kv, *refs):
    """One transformer Block (MHA + FF + two LayerNorms) for one query tile."""
    if share_kv:
        xq_ref = refs[0]
        rest = refs[1:]
    else:
        xq_ref, xkv_ref = refs[0], refs[1]
        rest = refs[2:]
    (wq_ref, wk_ref, wv_ref, wo_ref, bo_ref,
     w1_ref, b1_ref, w2_ref, b2_ref,
     g1_ref, be1_ref, g2_ref, be2_ref, o_ref) = rest

    cd = wq_ref.dtype                          # matmul compute dtype (f32 or bf16)
    approx = cd == jnp.bfloat16                # EUP reciprocal only in low-prec path

    tq = xq_ref.shape[1]
    E = xq_ref.shape[2]
    hidden = w1_ref.shape[1]

    xq_f32 = xq_ref[0].astype(jnp.float32)     # (tq, E) residual path kept in f32
    xq = xq_f32.astype(cd)
    if share_kv:
        xkv = xq                               # single query tile == full sequence
    else:
        xkv = xkv_ref[0]                       # pre-cast host-side to compute dtype
        if xkv.dtype != cd:
            xkv = xkv.astype(cd)

    # Hoist small params once.
    bo = bo_ref[0].astype(jnp.float32)
    b1 = b1_ref[0].astype(jnp.float32)
    b2 = b2_ref[0].astype(jnp.float32)
    g1 = g1_ref[0].astype(jnp.float32)
    be1 = be1_ref[0].astype(jnp.float32)
    g2 = g2_ref[0].astype(jnp.float32)
    be2 = be2_ref[0].astype(jnp.float32)

    # NOTE: the reference module multiplies by sqrt(head_dim) (not divide).
    scale = float(head_dim) ** 0.5

    # Fused QKV projections; cast straight to compute dtype (largest live
    # intermediates stay half-width in the bf16 path).
    q = jnp.dot(xq, wq_ref[...], preferred_element_type=jnp.float32).astype(cd)
    k = jnp.dot(xkv, wk_ref[...], preferred_element_type=jnp.float32).astype(cd)
    v = jnp.dot(xkv, wv_ref[...], preferred_element_type=jnp.float32).astype(cd)

    # TODO(synk): for very long S (esp. v7x, 64 MiB VMEM) stream K/V tiles from
    # HBM with an online-softmax (flash-style) inner loop instead of the full
    # (tq, S) score matrix.
    # TODO(synk): for n_heads >= ~8 switch this static unroll to lax.fori_loop
    # with pl.ds head slices to bound vreg live ranges.
    head_outs = []
    for h in range(n_heads):                   # static unroll over heads
        lo = h * head_dim
        qh = q[:, lo:lo + head_dim]
        kh = k[:, lo:lo + head_dim]
        vh = v[:, lo:lo + head_dim]
        # Contract over Dh without materializing kh.T (no XLU transpose).
        s = lax.dot_general(qh, kh, (((1,), (1,)), ((), ())),
                            preferred_element_type=jnp.float32) * scale  # (tq, S)
        s = s - jnp.max(s, axis=-1, keepdims=True)
        p = jnp.exp(s)
        p = p * pl.reciprocal(jnp.sum(p, axis=-1, keepdims=True), approx=approx)
        head_outs.append(jnp.dot(p.astype(cd), vh,
                                 preferred_element_type=jnp.float32))    # (tq, Dh)
    # Single full-contraction Wo matmul (K = H*Dh) instead of H shallow matmuls.
    o_all = jnp.concatenate(head_outs, axis=-1).astype(cd)               # (tq, H*Dh)
    mha = jnp.dot(o_all, wo_ref[...], preferred_element_type=jnp.float32) + bo

    h1 = _layernorm(xq_f32 + mha, g1, be1)     # (tq, E) f32
    h1c = h1.astype(cd)

    if ff_chunk >= hidden:
        # (tq, 4E) intermediate is small: two full matmuls, full MXU contraction.
        hmid = jnp.dot(h1c, w1_ref[...], preferred_element_type=jnp.float32) + b1
        hmid = jnp.maximum(hmid, 0.0)
        ff = jnp.dot(hmid.astype(cd), w2_ref[...],
                     preferred_element_type=jnp.float32) + b2
    else:
        # Bounded working set for very large tq*hidden.
        ff = jnp.zeros((tq, E), jnp.float32)
        for c0 in range(0, hidden, ff_chunk):
            hcol = jnp.dot(h1c, w1_ref[:, c0:c0 + ff_chunk],
                           preferred_element_type=jnp.float32) + b1[c0:c0 + ff_chunk]
            hcol = jnp.maximum(hcol, 0.0)
            ff = ff + jnp.dot(hcol.astype(cd), w2_ref[c0:c0 + ff_chunk, :],
                              preferred_element_type=jnp.float32)
        ff = ff + b2

    h2 = _layernorm(h1 + ff, g2, be2)
    o_ref[0] = h2.astype(o_ref.dtype)


def _vmem_capacity_bytes():
    try:
        return int(pltpu.get_tpu_info().vmem_capacity_bytes)
    except Exception:
        return 64 << 20   # conservative fallback (works on every generation)


def run_block(x, params, n_heads, head_dim, compute_dtype=jnp.float32):
    """Apply one Block via pallas_call; grid = (batch, query tiles)."""
    B, S, E = x.shape
    H, Dh = n_heads, head_dim
    (wq, wk, wv, wo, bo, w1, b1, w2, b2, g1, be1, g2, be2) = params
    hidden = w1.shape[1]
    cd = jnp.dtype(compute_dtype)

    # Matmul operands in compute dtype (bf16 halves weight DMA + VMEM);
    # biases / LN params stay f32, accumulation is always f32.
    wq_c = wq.astype(cd)
    wk_c = wk.astype(cd)
    wv_c = wv.astype(cd)
    wo_c = wo.astype(cd)
    w1_c = w1.astype(cd)
    w2_c = w2.astype(cd)

    # Query tile: prefer 256-multiples (v6e/v7x MXU granule), never a single
    # full-S tile for very long S.
    tq = S
    for cand in (512, 256, 128):
        if S >= cand and S % cand == 0:
            tq = cand
            break
    if tq == S and S > 512:
        for cand in range(512, 0, -1):
            if S % cand == 0:
                tq = cand
                break
    # TODO(synk): masked tail handling for S not divisible by the preferred
    # tile (currently falls back to the largest divisor of S).
    n_qt = S // tq
    share_kv = n_qt == 1       # one query tile == full sequence -> alias K/V input

    # FFN hidden chunk: full if (tq, 4E) f32 is small, else 256-multiples.
    if tq * hidden * 4 <= (8 << 20):
        ff_chunk = hidden
    else:
        ff_chunk = hidden
        for cand in (1024, 512, 256):
            if hidden % cand == 0 and hidden > cand:
                ff_chunk = cand
                break

    # Operands / specs for the activations.
    x_spec = pl.BlockSpec((1, tq, E), lambda b, qi: (b, qi, 0))
    base_specs = [x_spec]
    operands = [x]
    if not share_kv:
        base_specs.append(pl.BlockSpec((1, S, E), lambda b, qi: (b, 0, 0)))
        operands.append(x.astype(cd))          # pre-cast K/V operand

    weight_operands = [wq_c, wk_c, wv_c, wo_c, bo, w1_c, b1, w2_c, b2,
                       g1, be1, g2, be2]
    weight_shapes = [(E, H * Dh), (E, H * Dh), (E, H * Dh), (H * Dh, E), (1, E),
                     (E, hidden), (1, hidden), (hidden, E), (1, E),
                     (1, E), (1, E), (1, E), (1, E)]
    operands += weight_operands

    # Generation-aware VMEM budget including compute intermediates.
    ics = cd.itemsize
    xis = x.dtype.itemsize
    w_bytes = (3 * E * H * Dh + H * Dh * E + 2 * E * hidden + 6 * E + hidden) * ics
    act_bytes = 2 * tq * E * xis + (0 if share_kv else 2 * S * E * ics)
    inter_bytes = ((tq + 2 * S) * H * Dh) * ics + 2 * tq * S * 4 \
        + 3 * tq * E * 4 + tq * min(ff_chunk, hidden) * 4 + tq * H * Dh * ics
    out_bytes = 2 * tq * E * xis
    need = w_bytes + act_bytes + inter_bytes + out_bytes + (8 << 20)
    cap = max(_vmem_capacity_bytes() - (4 << 20), 32 << 20)
    vmem_limit = int(min(max(need, 32 << 20), cap))

    kernel = functools.partial(encoder_block_kernel, n_heads, head_dim,
                               ff_chunk, share_kv)

    def _call(single_buffer_weights):
        def const_spec(shape):
            index_map = lambda b, qi: (0,) * len(shape)
            if single_buffer_weights:
                # Constant-index blocks: double-buffering hides nothing, only
                # doubles residency -> single-buffer them.
                return pl.BlockSpec(shape, index_map,
                                    pipeline_mode=pl.Buffered(1))
            return pl.BlockSpec(shape, index_map)

        in_specs = list(base_specs) + [const_spec(s) for s in weight_shapes]
        return pl.pallas_call(
            kernel,
            out_shape=jax.ShapeDtypeStruct((B, S, E), x.dtype),
            grid=(B, n_qt),
            in_specs=in_specs,
            out_specs=pl.BlockSpec((1, tq, E), lambda b, qi: (b, qi, 0)),
            compiler_params=pltpu.CompilerParams(
                dimension_semantics=("parallel", "parallel"),
                vmem_limit_bytes=vmem_limit),
        )(*operands)

    try:
        return _call(True)
    except Exception:
        # Fallback for runtimes that reject Buffered(1) on constant specs.
        return _call(False)


def encoder_forward(x, all_params, n_heads, head_dim, compute_dtype=jnp.float32):
    for params in all_params:
        x = run_block(x, params, n_heads, head_dim, compute_dtype)
    return x


def init_block_params(key, n_heads, embed_dim, head_dim):
    ks = jax.random.split(key, 6)

    def lin(k, fan_in, shape):
        return jax.random.normal(k, shape, jnp.float32) / jnp.sqrt(float(fan_in))

    H, E, Dh = n_heads, embed_dim, head_dim
    wq = lin(ks[0], E, (E, H * Dh))            # fused per-head Q projections
    wk = lin(ks[1], E, (E, H * Dh))
    wv = lin(ks[2], E, (E, H * Dh))
    wo = lin(ks[3], H * Dh, (H * Dh, E))
    bo = jnp.zeros((1, E), jnp.float32)
    w1 = lin(ks[4], E, (E, 4 * E))
    b1 = jnp.zeros((1, 4 * E), jnp.float32)
    w2 = lin(ks[5], 4 * E, (4 * E, E))
    b2 = jnp.zeros((1, E), jnp.float32)
    g1 = jnp.ones((1, E), jnp.float32)
    be1 = jnp.zeros((1, E), jnp.float32)
    g2 = jnp.ones((1, E), jnp.float32)
    be2 = jnp.zeros((1, E), jnp.float32)
    return (wq, wk, wv, wo, bo, w1, b1, w2, b2, g1, be1, g2, be2)


# ---------------- pure-JAX reference (for correctness check) ----------------
def ref_block(x, params, n_heads, head_dim):
    (wq, wk, wv, wo, bo, w1, b1, w2, b2, g1, be1, g2, be2) = params
    heads = []
    for h in range(n_heads):                   # per-head, as in the PyTorch module
        sl = slice(h * head_dim, (h + 1) * head_dim)
        q = x @ wq[:, sl]
        k = x @ wk[:, sl]
        v = x @ wv[:, sl]
        w = jax.nn.softmax((q @ jnp.swapaxes(k, -2, -1)) * (head_dim ** 0.5),
                           axis=-1)
        heads.append(w @ v)
    mha = jnp.concatenate(heads, axis=-1) @ wo + bo[0]
    h1 = _layernorm(x + mha, g1[0], be1[0])
    ff = jnp.maximum(h1 @ w1 + b1[0], 0.0) @ w2 + b2[0]
    return _layernorm(h1 + ff, g2[0], be2[0])


def ref_encoder(x, all_params, n_heads, head_dim):
    for p in all_params:
        x = ref_block(x, p, n_heads, head_dim)
    return x


if __name__ == "__main__":
    # small config consistent with Encoder(n_blocks, n_heads, embed_dim, head_dim)
    n_blocks, n_heads, embed_dim, head_dim = 2, 2, 32, 16
    B, S = 2, 8

    root = jax.random.PRNGKey(0)
    x_key, *p_keys = jax.random.split(root, n_blocks + 1)
    x = jax.random.normal(x_key, (B, S, embed_dim), jnp.float32)
    all_params = [init_block_params(k, n_heads, embed_dim, head_dim)
                  for k in p_keys]

    expected = ref_encoder(x, all_params, n_heads, head_dim)

    # Exact-precision path (matches the PyTorch f32 semantics) — strict check.
    out_f32 = encoder_forward(x, all_params, n_heads, head_dim,
                              compute_dtype=jnp.float32)
    out_f32 = jax.block_until_ready(out_f32)
    assert out_f32.shape == (B, S, embed_dim)
    assert jnp.allclose(out_f32, expected, atol=1e-4, rtol=1e-4), "f32 mismatch"

    # bf16-matmul / f32-accumulate fast path: smoke test only.  With the
    # module's multiply-by-sqrt(head_dim) attention scale, bf16 weight
    # quantization can flip near-degenerate softmax rows, so an elementwise
    # comparison against the f32 reference is not a meaningful pass/fail gate.
    out_bf16 = encoder_forward(x, all_params, n_heads, head_dim,
                               compute_dtype=jnp.bfloat16)
    out_bf16 = jax.block_until_ready(out_bf16)
    assert out_bf16.shape == (B, S, embed_dim)
    assert bool(jnp.all(jnp.isfinite(out_bf16))), "bf16 produced non-finite values"

    print("KERNEL_OK")
</pallas_src>

<mosaic_0001>
module attributes {stable_mosaic.version = 11 : i64} {
  func.func @encoder_block_kernel(%arg0: i32, %arg1: i32, %arg2: memref<1x8x32xf32, #tpu.memory_space<vmem>>, %arg3: memref<32x32xf32, #tpu.memory_space<vmem>>, %arg4: memref<32x32xf32, #tpu.memory_space<vmem>>, %arg5: memref<32x32xf32, #tpu.memory_space<vmem>>, %arg6: memref<32x32xf32, #tpu.memory_space<vmem>>, %arg7: memref<1x32xf32, #tpu.memory_space<vmem>>, %arg8: memref<32x128xf32, #tpu.memory_space<vmem>>, %arg9: memref<1x128xf32, #tpu.memory_space<vmem>>, %arg10: memref<128x32xf32, #tpu.memory_space<vmem>>, %arg11: memref<1x32xf32, #tpu.memory_space<vmem>>, %arg12: memref<1x32xf32, #tpu.memory_space<vmem>>, %arg13: memref<1x32xf32, #tpu.memory_space<vmem>>, %arg14: memref<1x32xf32, #tpu.memory_space<vmem>>, %arg15: memref<1x32xf32, #tpu.memory_space<vmem>>, %arg16: memref<1x8x32xf32, #tpu.memory_space<vmem>>) attributes {dimension_semantics = [#tpu.dimension_semantics<parallel>, #tpu.dimension_semantics<parallel>], iteration_bounds = array<i64: 2, 1>, scalar_prefetch = 0 : i64, scratch_operands = 0 : i64, tpu.core_type = #tpu.core_type<tc>, window_params = [{transform_indices = @transform_0, window_bounds = array<i64: 1, 8, 32>}, {pipeline_mode = #tpu.pipeline_mode<synchronous>, transform_indices = @transform_1, window_bounds = array<i64: 32, 32>}, {pipeline_mode = #tpu.pipeline_mode<synchronous>, transform_indices = @transform_2, window_bounds = array<i64: 32, 32>}, {pipeline_mode = #tpu.pipeline_mode<synchronous>, transform_indices = @transform_3, window_bounds = array<i64: 32, 32>}, {pipeline_mode = #tpu.pipeline_mode<synchronous>, transform_indices = @transform_4, window_bounds = array<i64: 32, 32>}, {pipeline_mode = #tpu.pipeline_mode<synchronous>, transform_indices = @transform_5, window_bounds = array<i64: 1, 32>}, {pipeline_mode = #tpu.pipeline_mode<synchronous>, transform_indices = @transform_6, window_bounds = array<i64: 32, 128>}, {pipeline_mode = #tpu.pipeline_mode<synchronous>, transform_indices = @transform_7, window_bounds = array<i64: 1, 128>}, {pipeline_mode = #tpu.pipeline_mode<synchronous>, transform_indices = @transform_8, window_bounds = array<i64: 128, 32>}, {pipeline_mode = #tpu.pipeline_mode<synchronous>, transform_indices = @transform_9, window_bounds = array<i64: 1, 32>}, {pipeline_mode = #tpu.pipeline_mode<synchronous>, transform_indices = @transform_10, window_bounds = array<i64: 1, 32>}, {pipeline_mode = #tpu.pipeline_mode<synchronous>, transform_indices = @transform_11, window_bounds = array<i64: 1, 32>}, {pipeline_mode = #tpu.pipeline_mode<synchronous>, transform_indices = @transform_12, window_bounds = array<i64: 1, 32>}, {pipeline_mode = #tpu.pipeline_mode<synchronous>, transform_indices = @transform_13, window_bounds = array<i64: 1, 32>}, {transform_indices = @transform_14, window_bounds = array<i64: 1, 8, 32>}]} {
    %c0 = arith.constant 0 : index
    %c0_0 = arith.constant 0 : index
    %c0_1 = arith.constant 0 : index
    %0 = vector.load %arg2[%c0, %c0_0, %c0_1] : memref<1x8x32xf32, #tpu.memory_space<vmem>>, vector<1x8x32xf32>
    %1 = vector.shape_cast %0 : vector<1x8x32xf32> to vector<8x32xf32>
    %c0_2 = arith.constant 0 : index
    %c0_3 = arith.constant 0 : index
    %2 = vector.load %arg7[%c0_2, %c0_3] : memref<1x32xf32, #tpu.memory_space<vmem>>, vector<1x32xf32>
    %3 = vector.shape_cast %2 : vector<1x32xf32> to vector<32xf32>
    %c0_4 = arith.constant 0 : index
    %c0_5 = arith.constant 0 : index
    %4 = vector.load %arg9[%c0_4, %c0_5] : memref<1x128xf32, #tpu.memory_space<vmem>>, vector<1x128xf32>
    %5 = vector.shape_cast %4 : vector<1x128xf32> to vector<128xf32>
    %c0_6 = arith.constant 0 : index
    %c0_7 = arith.constant 0 : index
    %6 = vector.load %arg11[%c0_6, %c0_7] : memref<1x32xf32, #tpu.memory_space<vmem>>, vector<1x32xf32>
    %7 = vector.shape_cast %6 : vector<1x32xf32> to vector<32xf32>
    %c0_8 = arith.constant 0 : index
    %c0_9 = arith.constant 0 : index
    %8 = vector.load %arg12[%c0_8, %c0_9] : memref<1x32xf32, #tpu.memory_space<vmem>>, vector<1x32xf32>
    %9 = vector.shape_cast %8 : vector<1x32xf32> to vector<32xf32>
    %c0_10 = arith.constant 0 : index
    %c0_11 = arith.constant 0 : index
    %10 = vector.load %arg13[%c0_10, %c0_11] : memref<1x32xf32, #tpu.memory_space<vmem>>, vector<1x32xf32>
    %11 = vector.shape_cast %10 : vector<1x32xf32> to vector<32xf32>
    %c0_12 = arith.constant 0 : index
    %c0_13 = arith.constant 0 : index
    %12 = vector.load %arg14[%c0_12, %c0_13] : memref<1x32xf32, #tpu.memory_space<vmem>>, vector<1x32xf32>
    %13 = vector.shape_cast %12 : vector<1x32xf32> to vector<32xf32>
    %c0_14 = arith.constant 0 : index
    %c0_15 = arith.constant 0 : index
    %14 = vector.load %arg15[%c0_14, %c0_15] : memref<1x32xf32, #tpu.memory_space<vmem>>, vector<1x32xf32>
    %15 = vector.shape_cast %14 : vector<1x32xf32> to vector<32xf32>
    %c0_16 = arith.constant 0 : index
    %c0_17 = arith.constant 0 : index
    %16 = vector.load %arg3[%c0_16, %c0_17] : memref<32x32xf32, #tpu.memory_space<vmem>>, vector<32x32xf32>
    %cst = arith.constant dense<0.000000e+00> : vector<8x32xf32>
    %17 = tpu.matmul %1, %16, %cst {dimension_numbers = #tpu.dot_dimension_numbers<[1], [0], [0], [1], [0, 0, 1, 1], [], []>} : vector<8x32xf32>, vector<32x32xf32>, vector<8x32xf32> -> vector<8x32xf32>
    %c0_18 = arith.constant 0 : index
    %c0_19 = arith.constant 0 : index
    %18 = vector.load %arg4[%c0_18, %c0_19] : memref<32x32xf32, #tpu.memory_space<vmem>>, vector<32x32xf32>
    %cst_20 = arith.constant dense<0.000000e+00> : vector<8x32xf32>
    %19 = tpu.matmul %1, %18, %cst_20 {dimension_numbers = #tpu.dot_dimension_numbers<[1], [0], [0], [1], [0, 0, 1, 1], [], []>} : vector<8x32xf32>, vector<32x32xf32>, vector<8x32xf32> -> vector<8x32xf32>
    %c0_21 = arith.constant 0 : index
    %c0_22 = arith.constant 0 : index
    %20 = vector.load %arg5[%c0_21, %c0_22] : memref<32x32xf32, #tpu.memory_space<vmem>>, vector<32x32xf32>
    %cst_23 = arith.constant dense<0.000000e+00> : vector<8x32xf32>
    %21 = tpu.matmul %1, %20, %cst_23 {dimension_numbers = #tpu.dot_dimension_numbers<[1], [0], [0], [1], [0, 0, 1, 1], [], []>} : vector<8x32xf32>, vector<32x32xf32>, vector<8x32xf32> -> vector<8x32xf32>
    %22 = vector.extract_strided_slice %17 {offsets = [0, 0], sizes = [8, 16], strides = [1, 1]} : vector<8x32xf32> to vector<8x16xf32>
    %23 = vector.extract_strided_slice %19 {offsets = [0, 0], sizes = [8, 16], strides = [1, 1]} : vector<8x32xf32> to vector<8x16xf32>
    %24 = vector.extract_strided_slice %21 {offsets = [0, 0], sizes = [8, 16], strides = [1, 1]} : vector<8x32xf32> to vector<8x16xf32>
    %cst_24 = arith.constant dense<0.000000e+00> : vector<8x8xf32>
    %25 = tpu.matmul %22, %23, %cst_24 {dimension_numbers = #tpu.dot_dimension_numbers<[1], [1], [0], [0], [0, 0, 1, 0], [], []>} : vector<8x16xf32>, vector<8x16xf32>, vector<8x8xf32> -> vector<8x8xf32>
    %cst_25 = arith.constant 4.000000e+00 : f32
    %26 = vector.broadcast %cst_25 : f32 to vector<8x8xf32>
    %27 = arith.mulf %25, %26 : vector<8x8xf32>
    %cst_26 = arith.constant dense<0xFF800000> : vector<8xf32>
    %28 = vector.multi_reduction <maximumf>, %27, %cst_26 [1] : vector<8x8xf32> to vector<8xf32>
    %29 = vector.shape_cast %28 : vector<8xf32> to vector<8x1xf32>
    %30 = vector.broadcast %29 : vector<8x1xf32> to vector<8x8xf32>
    %31 = arith.subf %27, %30 : vector<8x8xf32>
    %32 = math.exp %31 : vector<8x8xf32>
    %cst_27 = arith.constant dense<0.000000e+00> : vector<8xf32>
    %33 = vector.multi_reduction <add>, %32, %cst_27 [1] : vector<8x8xf32> to vector<8xf32>
    %34 = vector.shape_cast %33 : vector<8xf32> to vector<8x1xf32>
    %35 = tpu.reciprocal %34 : vector<8x1xf32> -> vector<8x1xf32>
    %36 = vector.broadcast %35 : vector<8x1xf32> to vector<8x8xf32>
    %37 = arith.mulf %32, %36 : vector<8x8xf32>
    %cst_28 = arith.constant dense<0.000000e+00> : vector<8x16xf32>
    %38 = tpu.matmul %37, %24, %cst_28 {dimension_numbers = #tpu.dot_dimension_numbers<[1], [0], [0], [1], [0, 0, 1, 1], [], []>} : vector<8x8xf32>, vector<8x16xf32>, vector<8x16xf32> -> vector<8x16xf32>
    %39 = vector.extract_strided_slice %17 {offsets = [0, 16], sizes = [8, 16], strides = [1, 1]} : vector<8x32xf32> to vector<8x16xf32>
    %40 = vector.extract_strided_slice %19 {offsets = [0, 16], sizes = [8, 16], strides = [1, 1]} : vector<8x32xf32> to vector<8x16xf32>
    %41 = vector.extract_strided_slice %21 {offsets = [0, 16], sizes = [8, 16], strides = [1, 1]} : vector<8x32xf32> to vector<8x16xf32>
    %cst_29 = arith.constant dense<0.000000e+00> : vector<8x8xf32>
    %42 = tpu.matmul %39, %40, %cst_29 {dimension_numbers = #tpu.dot_dimension_numbers<[1], [1], [0], [0], [0, 0, 1, 0], [], []>} : vector<8x16xf32>, vector<8x16xf32>, vector<8x8xf32> -> vector<8x8xf32>
    %cst_30 = arith.constant 4.000000e+00 : f32
    %43 = vector.broadcast %cst_30 : f32 to vector<8x8xf32>
    %44 = arith.mulf %42, %43 : vector<8x8xf32>
    %cst_31 = arith.constant dense<0xFF800000> : vector<8xf32>
    %45 = vector.multi_reduction <maximumf>, %44, %cst_31 [1] : vector<8x8xf32> to vector<8xf32>
    %46 = vector.shape_cast %45 : vector<8xf32> to vector<8x1xf32>
    %47 = vector.broadcast %46 : vector<8x1xf32> to vector<8x8xf32>
    %48 = arith.subf %44, %47 : vector<8x8xf32>
    %49 = math.exp %48 : vector<8x8xf32>
    %cst_32 = arith.constant dense<0.000000e+00> : vector<8xf32>
    %50 = vector.multi_reduction <add>, %49, %cst_32 [1] : vector<8x8xf32> to vector<8xf32>
    %51 = vector.shape_cast %50 : vector<8xf32> to vector<8x1xf32>
    %52 = tpu.reciprocal %51 : vector<8x1xf32> -> vector<8x1xf32>
    %53 = vector.broadcast %52 : vector<8x1xf32> to vector<8x8xf32>
    %54 = arith.mulf %49, %53 : vector<8x8xf32>
    %cst_33 = arith.constant dense<0.000000e+00> : vector<8x16xf32>
    %55 = tpu.matmul %54, %41, %cst_33 {dimension_numbers = #tpu.dot_dimension_numbers<[1], [0], [0], [1], [0, 0, 1, 1], [], []>} : vector<8x8xf32>, vector<8x16xf32>, vector<8x16xf32> -> vector<8x16xf32>
    %56 = tpu.concatenate %38, %55 in 1 : vector<8x16xf32>, vector<8x16xf32> -> vector<8x32xf32>
    %c0_34 = arith.constant 0 : index
    %c0_35 = arith.constant 0 : index
    %57 = vector.load %arg6[%c0_34, %c0_35] : memref<32x32xf32, #tpu.memory_space<vmem>>, vector<32x32xf32>
    %cst_36 = arith.constant dense<0.000000e+00> : vector<8x32xf32>
    %58 = tpu.matmul %56, %57, %cst_36 {dimension_numbers = #tpu.dot_dimension_numbers<[1], [0], [0], [1], [0, 0, 1, 1], [], []>} : vector<8x32xf32>, vector<32x32xf32>, vector<8x32xf32> -> vector<8x32xf32>
    %59 = vector.shape_cast %3 : vector<32xf32> to vector<1x32xf32>
    %60 = vector.broadcast %59 : vector<1x32xf32> to vector<8x32xf32>
    %61 = arith.addf %58, %60 : vector<8x32xf32>
    %62 = arith.addf %1, %61 : vector<8x32xf32>
    %cst_37 = arith.constant dense<0.000000e+00> : vector<8xf32>
    %63 = vector.multi_reduction <add>, %62, %cst_37 [1] : vector<8x32xf32> to vector<8xf32>
    %64 = vector.shape_cast %63 : vector<8xf32> to vector<8x1xf32>
    %cst_38 = arith.constant 3.200000e+01 : f32
    %65 = vector.broadcast %cst_38 : f32 to vector<8x1xf32>
    %66 = arith.divf %64, %65 : vector<8x1xf32>
    %67 = vector.broadcast %66 : vector<8x1xf32> to vector<8x32xf32>
    %68 = arith.subf %62, %67 : vector<8x32xf32>
    %69 = arith.mulf %68, %68 : vector<8x32xf32>
    %cst_39 = arith.constant dense<0.000000e+00> : vector<8xf32>
    %70 = vector.multi_reduction <add>, %69, %cst_39 [1] : vector<8x32xf32> to vector<8xf32>
    %71 = vector.shape_cast %70 : vector<8xf32> to vector<8x1xf32>
    %cst_40 = arith.constant 3.200000e+01 : f32
    %72 = vector.broadcast %cst_40 : f32 to vector<8x1xf32>
    %73 = arith.divf %71, %72 : vector<8x1xf32>
    %74 = vector.broadcast %66 : vector<8x1xf32> to vector<8x32xf32>
    %75 = arith.subf %62, %74 : vector<8x32xf32>
    %cst_41 = arith.constant 9.99999974E-6 : f32
    %76 = vector.broadcast %cst_41 : f32 to vector<8x1xf32>
    %77 = arith.addf %73, %76 : vector<8x1xf32>
    %78 = math.rsqrt %77 : vector<8x1xf32>
    %79 = vector.broadcast %78 : vector<8x1xf32> to vector<8x32xf32>
    %80 = arith.mulf %75, %79 : vector<8x32xf32>
    %81 = vector.shape_cast %9 : vector<32xf32> to vector<1x32xf32>
    %82 = vector.broadcast %81 : vector<1x32xf32> to vector<8x32xf32>
    %83 = arith.mulf %80, %82 : vector<8x32xf32>
    %84 = vector.shape_cast %11 : vector<32xf32> to vector<1x32xf32>
    %85 = vector.broadcast %84 : vector<1x32xf32> to vector<8x32xf32>
    %86 = arith.addf %83, %85 : vector<8x32xf32>
    %c0_42 = arith.constant 0 : index
    %c0_43 = arith.constant 0 : index
    %87 = vector.load %arg8[%c0_42, %c0_43] : memref<32x128xf32, #tpu.memory_space<vmem>>, vector<32x128xf32>
    %cst_44 = arith.constant dense<0.000000e+00> : vector<8x128xf32>
    %88 = tpu.matmul %86, %87, %cst_44 {dimension_numbers = #tpu.dot_dimension_numbers<[1], [0], [0], [1], [0, 0, 1, 1], [], []>} : vector<8x32xf32>, vector<32x128xf32>, vector<8x128xf32> -> vector<8x128xf32>
    %89 = vector.shape_cast %5 : vector<128xf32> to vector<1x128xf32>
    %90 = vector.broadcast %89 : vector<1x128xf32> to vector<8x128xf32>
    %91 = arith.addf %88, %90 : vector<8x128xf32>
    %cst_45 = arith.constant 0.000000e+00 : f32
    %92 = vector.broadcast %cst_45 : f32 to vector<8x128xf32>
    %93 = arith.maximumf %91, %92 : vector<8x128xf32>
    %c0_46 = arith.constant 0 : index
    %c0_47 = arith.constant 0 : index
    %94 = vector.load %arg10[%c0_46, %c0_47] : memref<128x32xf32, #tpu.memory_space<vmem>>, vector<128x32xf32>
    %cst_48 = arith.constant dense<0.000000e+00> : vector<8x32xf32>
    %95 = tpu.matmul %93, %94, %cst_48 {dimension_numbers = #tpu.dot_dimension_numbers<[1], [0], [0], [1], [0, 0, 1, 1], [], []>} : vector<8x128xf32>, vector<128x32xf32>, vector<8x32xf32> -> vector<8x32xf32>
    %96 = vector.shape_cast %7 : vector<32xf32> to vector<1x32xf32>
    %97 = vector.broadcast %96 : vector<1x32xf32> to vector<8x32xf32>
    %98 = arith.addf %95, %97 : vector<8x32xf32>
    %99 = arith.addf %86, %98 : vector<8x32xf32>
    %cst_49 = arith.constant dense<0.000000e+00> : vector<8xf32>
    %100 = vector.multi_reduction <add>, %99, %cst_49 [1] : vector<8x32xf32> to vector<8xf32>
    %101 = vector.shape_cast %100 : vector<8xf32> to vector<8x1xf32>
    %cst_50 = arith.constant 3.200000e+01 : f32
    %102 = vector.broadcast %cst_50 : f32 to vector<8x1xf32>
    %103 = arith.divf %101, %102 : vector<8x1xf32>
    %104 = vector.broadcast %103 : vector<8x1xf32> to vector<8x32xf32>
    %105 = arith.subf %99, %104 : vector<8x32xf32>
    %106 = arith.mulf %105, %105 : vector<8x32xf32>
    %cst_51 = arith.constant dense<0.000000e+00> : vector<8xf32>
    %107 = vector.multi_reduction <add>, %106, %cst_51 [1] : vector<8x32xf32> to vector<8xf32>
    %108 = vector.shape_cast %107 : vector<8xf32> to vector<8x1xf32>
    %cst_52 = arith.constant 3.200000e+01 : f32
    %109 = vector.broadcast %cst_52 : f32 to vector<8x1xf32>
    %110 = arith.divf %108, %109 : vector<8x1xf32>
    %111 = vector.broadcast %103 : vector<8x1xf32> to vector<8x32xf32>
    %112 = arith.subf %99, %111 : vector<8x32xf32>
    %cst_53 = arith.constant 9.99999974E-6 : f32
    %113 = vector.broadcast %cst_53 : f32 to vector<8x1xf32>
    %114 = arith.addf %110, %113 : vector<8x1xf32>
    %115 = math.rsqrt %114 : vector<8x1xf32>
    %116 = vector.broadcast %115 : vector<8x1xf32> to vector<8x32xf32>
    %117 = arith.mulf %112, %116 : vector<8x32xf32>
    %118 = vector.shape_cast %13 : vector<32xf32> to vector<1x32xf32>
    %119 = vector.broadcast %118 : vector<1x32xf32> to vector<8x32xf32>
    %120 = arith.mulf %117, %119 : vector<8x32xf32>
    %121 = vector.shape_cast %15 : vector<32xf32> to vector<1x32xf32>
    %122 = vector.broadcast %121 : vector<1x32xf32> to vector<8x32xf32>
    %123 = arith.addf %120, %122 : vector<8x32xf32>
    %c0_54 = arith.constant 0 : index
    %c0_55 = arith.constant 0 : index
    %c0_56 = arith.constant 0 : index
    %124 = vector.load %arg16[%c0_54, %c0_55, %c0_56] : memref<1x8x32xf32, #tpu.memory_space<vmem>>, vector<1x8x32xf32>
    %125 = vector.shape_cast %124 : vector<1x8x32xf32> to vector<8x32xf32>
    %126 = vector.shape_cast %123 : vector<8x32xf32> to vector<1x8x32xf32>
    tpu.vector_store %arg16[%c0_54, %c0_55, %c0_56], %126 {strides = array<i32>} : memref<1x8x32xf32, #tpu.memory_space<vmem>>, vector<1x8x32xf32>,
    return
  }
  func.func @transform_0(%arg0: i32, %arg1: i32) -> (i32, i32, i32) {
    %c0_i32 = arith.constant 0 : i32
    %c0_i32_0 = arith.constant 0 : i32
    return %arg0, %arg1, %c0_i32 : i32, i32, i32
  }
  func.func @transform_1(%arg0: i32, %arg1: i32) -> (i32, i32) {
    %c0_i32 = arith.constant 0 : i32
    %c0_i32_0 = arith.constant 0 : i32
    %c0_i32_1 = arith.constant 0 : i32
    return %c0_i32, %c0_i32_0 : i32, i32
  }
  func.func @transform_2(%arg0: i32, %arg1: i32) -> (i32, i32) {
    %c0_i32 = arith.constant 0 : i32
    %c0_i32_0 = arith.constant 0 : i32
    %c0_i32_1 = arith.constant 0 : i32
    return %c0_i32, %c0_i32_0 : i32, i32
  }
  func.func @transform_3(%arg0: i32, %arg1: i32) -> (i32, i32) {
    %c0_i32 = arith.constant 0 : i32
    %c0_i32_0 = arith.constant 0 : i32
    %c0_i32_1 = arith.constant 0 : i32
    return %c0_i32, %c0_i32_0 : i32, i32
  }
  func.func @transform_4(%arg0: i32, %arg1: i32) -> (i32, i32) {
    %c0_i32 = arith.constant 0 : i32
    %c0_i32_0 = arith.constant 0 : i32
    %c0_i32_1 = arith.constant 0 : i32
    return %c0_i32, %c0_i32_0 : i32, i32
  }
  func.func @transform_5(%arg0: i32, %arg1: i32) -> (i32, i32) {
    %c0_i32 = arith.constant 0 : i32
    %c0_i32_0 = arith.constant 0 : i32
    %c0_i32_1 = arith.constant 0 : i32
    return %c0_i32, %c0_i32_0 : i32, i32
  }
  func.func @transform_6(%arg0: i32, %arg1: i32) -> (i32, i32) {
    %c0_i32 = arith.constant 0 : i32
    %c0_i32_0 = arith.constant 0 : i32
    %c0_i32_1 = arith.constant 0 : i32
    return %c0_i32, %c0_i32_0 : i32, i32
  }
  func.func @transform_7(%arg0: i32, %arg1: i32) -> (i32, i32) {
    %c0_i32 = arith.constant 0 : i32
    %c0_i32_0 = arith.constant 0 : i32
    %c0_i32_1 = arith.constant 0 : i32
    return %c0_i32, %c0_i32_0 : i32, i32
  }
  func.func @transform_8(%arg0: i32, %arg1: i32) -> (i32, i32) {
    %c0_i32 = arith.constant 0 : i32
    %c0_i32_0 = arith.constant 0 : i32
    %c0_i32_1 = arith.constant 0 : i32
    return %c0_i32, %c0_i32_0 : i32, i32
  }
  func.func @transform_9(%arg0: i32, %arg1: i32) -> (i32, i32) {
    %c0_i32 = arith.constant 0 : i32
    %c0_i32_0 = arith.constant 0 : i32
    %c0_i32_1 = arith.constant 0 : i32
    return %c0_i32, %c0_i32_0 : i32, i32
  }
  func.func @transform_10(%arg0: i32, %arg1: i32) -> (i32, i32) {
    %c0_i32 = arith.constant 0 : i32
    %c0_i32_0 = arith.constant 0 : i32
    %c0_i32_1 = arith.constant 0 : i32
    return %c0_i32, %c0_i32_0 : i32, i32
  }
  func.func @transform_11(%arg0: i32, %arg1: i32) -> (i32, i32) {
    %c0_i32 = arith.constant 0 : i32
    %c0_i32_0 = arith.constant 0 : i32
    %c0_i32_1 = arith.constant 0 : i32
    return %c0_i32, %c0_i32_0 : i32, i32
  }
  func.func @transform_12(%arg0: i32, %arg1: i32) -> (i32, i32) {
    %c0_i32 = arith.constant 0 : i32
    %c0_i32_0 = arith.constant 0 : i32
    %c0_i32_1 = arith.constant 0 : i32
    return %c0_i32, %c0_i32_0 : i32, i32
  }
  func.func @transform_13(%arg0: i32, %arg1: i32) -> (i32, i32) {
    %c0_i32 = arith.constant 0 : i32
    %c0_i32_0 = arith.constant 0 : i32
    %c0_i32_1 = arith.constant 0 : i32
    return %c0_i32, %c0_i32_0 : i32, i32
  }
  func.func @transform_14(%arg0: i32, %arg1: i32) -> (i32, i32, i32) {
    %c0_i32 = arith.constant 0 : i32
    %c0_i32_0 = arith.constant 0 : i32
    return %arg0, %arg1, %c0_i32 : i32, i32, i32
  }
}

module attributes {stable_mosaic.version = 11 : i64} {
  func.func @encoder_block_kernel(%arg0: i32, %arg1: i32, %arg2: memref<1x8x32xf32, #tpu.memory_space<vmem>>, %arg3: memref<32x32xf32, #tpu.memory_space<vmem>>, %arg4: memref<32x32xf32, #tpu.memory_space<vmem>>, %arg5: memref<32x32xf32, #tpu.memory_space<vmem>>, %arg6: memref<32x32xf32, #tpu.memory_space<vmem>>, %arg7: memref<1x32xf32, #tpu.memory_space<vmem>>, %arg8: memref<32x128xf32, #tpu.memory_space<vmem>>, %arg9: memref<1x128xf32, #tpu.memory_space<vmem>>, %arg10: memref<128x32xf32, #tpu.memory_space<vmem>>, %arg11: memref<1x32xf32, #tpu.memory_space<vmem>>, %arg12: memref<1x32xf32, #tpu.memory_space<vmem>>, %arg13: memref<1x32xf32, #tpu.memory_space<vmem>>, %arg14: memref<1x32xf32, #tpu.memory_space<vmem>>, %arg15: memref<1x32xf32, #tpu.memory_space<vmem>>, %arg16: memref<1x8x32xf32, #tpu.memory_space<vmem>>) attributes {dimension_semantics = [#tpu.dimension_semantics<parallel>, #tpu.dimension_semantics<parallel>], iteration_bounds = array<i64: 2, 1>, scalar_prefetch = 0 : i64, scratch_operands = 0 : i64, tpu.core_type = #tpu.core_type<tc>, window_params = [{transform_indices = @transform_0, window_bounds = array<i64: 1, 8, 32>}, {pipeline_mode = #tpu.pipeline_mode<synchronous>, transform_indices = @transform_1, window_bounds = array<i64: 32, 32>}, {pipeline_mode = #tpu.pipeline_mode<synchronous>, transform_indices = @transform_2, window_bounds = array<i64: 32, 32>}, {pipeline_mode = #tpu.pipeline_mode<synchronous>, transform_indices = @transform_3, window_bounds = array<i64: 32, 32>}, {pipeline_mode = #tpu.pipeline_mode<synchronous>, transform_indices = @transform_4, window_bounds = array<i64: 32, 32>}, {pipeline_mode = #tpu.pipeline_mode<synchronous>, transform_indices = @transform_5, window_bounds = array<i64: 1, 32>}, {pipeline_mode = #tpu.pipeline_mode<synchronous>, transform_indices = @transform_6, window_bounds = array<i64: 32, 128>}, {pipeline_mode = #tpu.pipeline_mode<synchronous>, transform_indices = @transform_7, window_bounds = array<i64: 1, 128>}, {pipeline_mode = #tpu.pipeline_mode<synchronous>, transform_indices = @transform_8, window_bounds = array<i64: 128, 32>}, {pipeline_mode = #tpu.pipeline_mode<synchronous>, transform_indices = @transform_9, window_bounds = array<i64: 1, 32>}, {pipeline_mode = #tpu.pipeline_mode<synchronous>, transform_indices = @transform_10, window_bounds = array<i64: 1, 32>}, {pipeline_mode = #tpu.pipeline_mode<synchronous>, transform_indices = @transform_11, window_bounds = array<i64: 1, 32>}, {pipeline_mode = #tpu.pipeline_mode<synchronous>, transform_indices = @transform_12, window_bounds = array<i64: 1, 32>}, {pipeline_mode = #tpu.pipeline_mode<synchronous>, transform_indices = @transform_13, window_bounds = array<i64: 1, 32>}, {transform_indices = @transform_14, window_bounds = array<i64: 1, 8, 32>}]} {
    %c0 = arith.constant 0 : index
    %c0_0 = arith.constant 0 : index
    %c0_1 = arith.constant 0 : index
    %0 = vector.load %arg2[%c0, %c0_0, %c0_1] : memref<1x8x32xf32, #tpu.memory_space<vmem>>, vector<1x8x32xf32>
    %1 = vector.shape_cast %0 : vector<1x8x32xf32> to vector<8x32xf32>
    %c0_2 = arith.constant 0 : index
    %c0_3 = arith.constant 0 : index
    %2 = vector.load %arg7[%c0_2, %c0_3] : memref<1x32xf32, #tpu.memory_space<vmem>>, vector<1x32xf32>
    %3 = vector.shape_cast %2 : vector<1x32xf32> to vector<32xf32>
    %c0_4 = arith.constant 0 : index
    %c0_5 = arith.constant 0 : index
    %4 = vector.load %arg9[%c0_4, %c0_5] : memref<1x128xf32, #tpu.memory_space<vmem>>, vector<1x128xf32>
    %5 = vector.shape_cast %4 : vector<1x128xf32> to vector<128xf32>
    %c0_6 = arith.constant 0 : index
    %c0_7 = arith.constant 0 : index
    %6 = vector.load %arg11[%c0_6, %c0_7] : memref<1x32xf32, #tpu.memory_space<vmem>>, vector<1x32xf32>
    %7 = vector.shape_cast %6 : vector<1x32xf32> to vector<32xf32>
    %c0_8 = arith.constant 0 : index
    %c0_9 = arith.constant 0 : index
    %8 = vector.load %arg12[%c0_8, %c0_9] : memref<1x32xf32, #tpu.memory_space<vmem>>, vector<1x32xf32>
    %9 = vector.shape_cast %8 : vector<1x32xf32> to vector<32xf32>
    %c0_10 = arith.constant 0 : index
    %c0_11 = arith.constant 0 : index
    %10 = vector.load %arg13[%c0_10, %c0_11] : memref<1x32xf32, #tpu.memory_space<vmem>>, vector<1x32xf32>
    %11 = vector.shape_cast %10 : vector<1x32xf32> to vector<32xf32>
    %c0_12 = arith.constant 0 : index
    %c0_13 = arith.constant 0 : index
    %12 = vector.load %arg14[%c0_12, %c0_13] : memref<1x32xf32, #tpu.memory_space<vmem>>, vector<1x32xf32>
    %13 = vector.shape_cast %12 : vector<1x32xf32> to vector<32xf32>
    %c0_14 = arith.constant 0 : index
    %c0_15 = arith.constant 0 : index
    %14 = vector.load %arg15[%c0_14, %c0_15] : memref<1x32xf32, #tpu.memory_space<vmem>>, vector<1x32xf32>
    %15 = vector.shape_cast %14 : vector<1x32xf32> to vector<32xf32>
    %c0_16 = arith.constant 0 : index
    %c0_17 = arith.constant 0 : index
    %16 = vector.load %arg3[%c0_16, %c0_17] : memref<32x32xf32, #tpu.memory_space<vmem>>, vector<32x32xf32>
    %cst = arith.constant dense<0.000000e+00> : vector<8x32xf32>
    %17 = tpu.matmul %1, %16, %cst {dimension_numbers = #tpu.dot_dimension_numbers<[1], [0], [0], [1], [0, 0, 1, 1], [], []>} : vector<8x32xf32>, vector<32x32xf32>, vector<8x32xf32> -> vector<8x32xf32>
    %c0_18 = arith.constant 0 : index
    %c0_19 = arith.constant 0 : index
    %18 = vector.load %arg4[%c0_18, %c0_19] : memref<32x32xf32, #tpu.memory_space<vmem>>, vector<32x32xf32>
    %cst_20 = arith.constant dense<0.000000e+00> : vector<8x32xf32>
    %19 = tpu.matmul %1, %18, %cst_20 {dimension_numbers = #tpu.dot_dimension_numbers<[1], [0], [0], [1], [0, 0, 1, 1], [], []>} : vector<8x32xf32>, vector<32x32xf32>, vector<8x32xf32> -> vector<8x32xf32>
    %c0_21 = arith.constant 0 : index
    %c0_22 = arith.constant 0 : index
    %20 = vector.load %arg5[%c0_21, %c0_22] : memref<32x32xf32, #tpu.memory_space<vmem>>, vector<32x32xf32>
    %cst_23 = arith.constant dense<0.000000e+00> : vector<8x32xf32>
    %21 = tpu.matmul %1, %20, %cst_23 {dimension_numbers = #tpu.dot_dimension_numbers<[1], [0], [0], [1], [0, 0, 1, 1], [], []>} : vector<8x32xf32>, vector<32x32xf32>, vector<8x32xf32> -> vector<8x32xf32>
    %22 = vector.extract_strided_slice %17 {offsets = [0, 0], sizes = [8, 16], strides = [1, 1]} : vector<8x32xf32> to vector<8x16xf32>
    %23 = vector.extract_strided_slice %19 {offsets = [0, 0], sizes = [8, 16], strides = [1, 1]} : vector<8x32xf32> to vector<8x16xf32>
    %24 = vector.extract_strided_slice %21 {offsets = [0, 0], sizes = [8, 16], strides = [1, 1]} : vector<8x32xf32> to vector<8x16xf32>
    %cst_24 = arith.constant dense<0.000000e+00> : vector<8x8xf32>
    %25 = tpu.matmul %22, %23, %cst_24 {dimension_numbers = #tpu.dot_dimension_numbers<[1], [1], [0], [0], [0, 0, 1, 0], [], []>} : vector<8x16xf32>, vector<8x16xf32>, vector<8x8xf32> -> vector<8x8xf32>
    %cst_25 = arith.constant 4.000000e+00 : f32
    %26 = vector.broadcast %cst_25 : f32 to vector<8x8xf32>
    %27 = arith.mulf %25, %26 : vector<8x8xf32>
    %cst_26 = arith.constant dense<0xFF800000> : vector<8xf32>
    %28 = vector.multi_reduction <maximumf>, %27, %cst_26 [1] : vector<8x8xf32> to vector<8xf32>
    %29 = vector.shape_cast %28 : vector<8xf32> to vector<8x1xf32>
    %30 = vector.broadcast %29 : vector<8x1xf32> to vector<8x8xf32>
    %31 = arith.subf %27, %30 : vector<8x8xf32>
    %32 = math.exp %31 : vector<8x8xf32>
    %cst_27 = arith.constant dense<0.000000e+00> : vector<8xf32>
    %33 = vector.multi_reduction <add>, %32, %cst_27 [1] : vector<8x8xf32> to vector<8xf32>
    %34 = vector.shape_cast %33 : vector<8xf32> to vector<8x1xf32>
    %35 = tpu.reciprocal %34 : vector<8x1xf32> -> vector<8x1xf32>
    %36 = vector.broadcast %35 : vector<8x1xf32> to vector<8x8xf32>
    %37 = arith.mulf %32, %36 : vector<8x8xf32>
    %cst_28 = arith.constant dense<0.000000e+00> : vector<8x16xf32>
    %38 = tpu.matmul %37, %24, %cst_28 {dimension_numbers = #tpu.dot_dimension_numbers<[1], [0], [0], [1], [0, 0, 1, 1], [], []>} : vector<8x8xf32>, vector<8x16xf32>, vector<8x16xf32> -> vector<8x16xf32>
    %39 = vector.extract_strided_slice %17 {offsets = [0, 16], sizes = [8, 16], strides = [1, 1]} : vector<8x32xf32> to vector<8x16xf32>
    %40 = vector.extract_strided_slice %19 {offsets = [0, 16], sizes = [8, 16], strides = [1, 1]} : vector<8x32xf32> to vector<8x16xf32>
    %41 = vector.extract_strided_slice %21 {offsets = [0, 16], sizes = [8, 16], strides = [1, 1]} : vector<8x32xf32> to vector<8x16xf32>
    %cst_29 = arith.constant dense<0.000000e+00> : vector<8x8xf32>
    %42 = tpu.matmul %39, %40, %cst_29 {dimension_numbers = #tpu.dot_dimension_numbers<[1], [1], [0], [0], [0, 0, 1, 0], [], []>} : vector<8x16xf32>, vector<8x16xf32>, vector<8x8xf32> -> vector<8x8xf32>
    %cst_30 = arith.constant 4.000000e+00 : f32
    %43 = vector.broadcast %cst_30 : f32 to vector<8x8xf32>
    %44 = arith.mulf %42, %43 : vector<8x8xf32>
    %cst_31 = arith.constant dense<0xFF800000> : vector<8xf32>
    %45 = vector.multi_reduction <maximumf>, %44, %cst_31 [1] : vector<8x8xf32> to vector<8xf32>
    %46 = vector.shape_cast %45 : vector<8xf32> to vector<8x1xf32>
    %47 = vector.broadcast %46 : vector<8x1xf32> to vector<8x8xf32>
    %48 = arith.subf %44, %47 : vector<8x8xf32>
    %49 = math.exp %48 : vector<8x8xf32>
    %cst_32 = arith.constant dense<0.000000e+00> : vector<8xf32>
    %50 = vector.multi_reduction <add>, %49, %cst_32 [1] : vector<8x8xf32> to vector<8xf32>
    %51 = vector.shape_cast %50 : vector<8xf32> to vector<8x1xf32>
    %52 = tpu.reciprocal %51 : vector<8x1xf32> -> vector<8x1xf32>
    %53 = vector.broadcast %52 : vector<8x1xf32> to vector<8x8xf32>
    %54 = arith.mulf %49, %53 : vector<8x8xf32>
    %cst_33 = arith.constant dense<0.000000e+00> : vector<8x16xf32>
    %55 = tpu.matmul %54, %41, %cst_33 {dimension_numbers = #tpu.dot_dimension_numbers<[1], [0], [0], [1], [0, 0, 1, 1], [], []>} : vector<8x8xf32>, vector<8x16xf32>, vector<8x16xf32> -> vector<8x16xf32>
    %56 = tpu.concatenate %38, %55 in 1 : vector<8x16xf32>, vector<8x16xf32> -> vector<8x32xf32>
    %c0_34 = arith.constant 0 : index
    %c0_35 = arith.constant 0 : index
    %57 = vector.load %arg6[%c0_34, %c0_35] : memref<32x32xf32, #tpu.memory_space<vmem>>, vector<32x32xf32>
    %cst_36 = arith.constant dense<0.000000e+00> : vector<8x32xf32>
    %58 = tpu.matmul %56, %57, %cst_36 {dimension_numbers = #tpu.dot_dimension_numbers<[1], [0], [0], [1], [0, 0, 1, 1], [], []>} : vector<8x32xf32>, vector<32x32xf32>, vector<8x32xf32> -> vector<8x32xf32>
    %59 = vector.shape_cast %3 : vector<32xf32> to vector<1x32xf32>
    %60 = vector.broadcast %59 : vector<1x32xf32> to vector<8x32xf32>
    %61 = arith.addf %58, %60 : vector<8x32xf32>
    %62 = arith.addf %1, %61 : vector<8x32xf32>
    %cst_37 = arith.constant dense<0.000000e+00> : vector<8xf32>
    %63 = vector.multi_reduction <add>, %62, %cst_37 [1] : vector<8x32xf32> to vector<8xf32>
    %64 = vector.shape_cast %63 : vector<8xf32> to vector<8x1xf32>
    %cst_38 = arith.constant 3.200000e+01 : f32
    %65 = vector.broadcast %cst_38 : f32 to vector<8x1xf32>
    %66 = arith.divf %64, %65 : vector<8x1xf32>
    %67 = vector.broadcast %66 : vector<8x1xf32> to vector<8x32xf32>
    %68 = arith.subf %62, %67 : vector<8x32xf32>
    %69 = arith.mulf %68, %68 : vector<8x32xf32>
    %cst_39 = arith.constant dense<0.000000e+00> : vector<8xf32>
    %70 = vector.multi_reduction <add>, %69, %cst_39 [1] : vector<8x32xf32> to vector<8xf32>
    %71 = vector.shape_cast %70 : vector<8xf32> to vector<8x1xf32>
    %cst_40 = arith.constant 3.200000e+01 : f32
    %72 = vector.broadcast %cst_40 : f32 to vector<8x1xf32>
    %73 = arith.divf %71, %72 : vector<8x1xf32>
    %74 = vector.broadcast %66 : vector<8x1xf32> to vector<8x32xf32>
    %75 = arith.subf %62, %74 : vector<8x32xf32>
    %cst_41 = arith.constant 9.99999974E-6 : f32
    %76 = vector.broadcast %cst_41 : f32 to vector<8x1xf32>
    %77 = arith.addf %73, %76 : vector<8x1xf32>
    %78 = math.rsqrt %77 : vector<8x1xf32>
    %79 = vector.broadcast %78 : vector<8x1xf32> to vector<8x32xf32>
    %80 = arith.mulf %75, %79 : vector<8x32xf32>
    %81 = vector.shape_cast %9 : vector<32xf32> to vector<1x32xf32>
    %82 = vector.broadcast %81 : vector<1x32xf32> to vector<8x32xf32>
    %83 = arith.mulf %80, %82 : vector<8x32xf32>
    %84 = vector.shape_cast %11 : vector<32xf32> to vector<1x32xf32>
    %85 = vector.broadcast %84 : vector<1x32xf32> to vector<8x32xf32>
    %86 = arith.addf %83, %85 : vector<8x32xf32>
    %c0_42 = arith.constant 0 : index
    %c0_43 = arith.constant 0 : index
    %87 = vector.load %arg8[%c0_42, %c0_43] : memref<32x128xf32, #tpu.memory_space<vmem>>, vector<32x128xf32>
    %cst_44 = arith.constant dense<0.000000e+00> : vector<8x128xf32>
    %88 = tpu.matmul %86, %87, %cst_44 {dimension_numbers = #tpu.dot_dimension_numbers<[1], [0], [0], [1], [0, 0, 1, 1], [], []>} : vector<8x32xf32>, vector<32x128xf32>, vector<8x128xf32> -> vector<8x128xf32>
    %89 = vector.shape_cast %5 : vector<128xf32> to vector<1x128xf32>
    %90 = vector.broadcast %89 : vector<1x128xf32> to vector<8x128xf32>
    %91 = arith.addf %88, %90 : vector<8x128xf32>
    %cst_45 = arith.constant 0.000000e+00 : f32
    %92 = vector.broadcast %cst_45 : f32 to vector<8x128xf32>
    %93 = arith.maximumf %91, %92 : vector<8x128xf32>
    %c0_46 = arith.constant 0 : index
    %c0_47 = arith.constant 0 : index
    %94 = vector.load %arg10[%c0_46, %c0_47] : memref<128x32xf32, #tpu.memory_space<vmem>>, vector<128x32xf32>
    %cst_48 = arith.constant dense<0.000000e+00> : vector<8x32xf32>
    %95 = tpu.matmul %93, %94, %cst_48 {dimension_numbers = #tpu.dot_dimension_numbers<[1], [0], [0], [1], [0, 0, 1, 1], [], []>} : vector<8x128xf32>, vector<128x32xf32>, vector<8x32xf32> -> vector<8x32xf32>
    %96 = vector.shape_cast %7 : vector<32xf32> to vector<1x32xf32>
    %97 = vector.broadcast %96 : vector<1x32xf32> to vector<8x32xf32>
    %98 = arith.addf %95, %97 : vector<8x32xf32>
    %99 = arith.addf %86, %98 : vector<8x32xf32>
    %cst_49 = arith.constant dense<0.000000e+00> : vector<8xf32>
    %100 = vector.multi_reduction <add>, %99, %cst_49 [1] : vector<8x32xf32> to vector<8xf32>
    %101 = vector.shape_cast %100 : vector<8xf32> to vector<8x1xf32>
    %cst_50 = arith.constant 3.200000e+01 : f32
    %102 = vector.broadcast %cst_50 : f32 to vector<8x1xf32>
    %103 = arith.divf %101, %102 : vector<8x1xf32>
    %104 = vector.broadcast %103 : vector<8x1xf32> to vector<8x32xf32>
    %105 = arith.subf %99, %104 : vector<8x32xf32>
    %106 = arith.mulf %105, %105 : vector<8x32xf32>
    %cst_51 = arith.constant dense<0.000000e+00> : vector<8xf32>
    %107 = vector.multi_reduction <add>, %106, %cst_51 [1] : vector<8x32xf32> to vector<8xf32>
    %108 = vector.shape_cast %107 : vector<8xf32> to vector<8x1xf32>
    %cst_52 = arith.constant 3.200000e+01 : f32
    %109 = vector.broadcast %cst_52 : f32 to vector<8x1xf32>
    %110 = arith.divf %108, %109 : vector<8x1xf32>
    %111 = vector.broadcast %103 : vector<8x1xf32> to vector<8x32xf32>
    %112 = arith.subf %99, %111 : vector<8x32xf32>
    %cst_53 = arith.constant 9.99999974E-6 : f32
    %113 = vector.broadcast %cst_53 : f32 to vector<8x1xf32>
    %114 = arith.addf %110, %113 : vector<8x1xf32>
    %115 = math.rsqrt %114 : vector<8x1xf32>
    %116 = vector.broadcast %115 : vector<8x1xf32> to vector<8x32xf32>
    %117 = arith.mulf %112, %116 : vector<8x32xf32>
    %118 = vector.shape_cast %13 : vector<32xf32> to vector<1x32xf32>
    %119 = vector.broadcast %118 : vector<1x32xf32> to vector<8x32xf32>
    %120 = arith.mulf %117, %119 : vector<8x32xf32>
    %121 = vector.shape_cast %15 : vector<32xf32> to vector<1x32xf32>
    %122 = vector.broadcast %121 : vector<1x32xf32> to vector<8x32xf32>
    %123 = arith.addf %120, %122 : vector<8x32xf32>
    %c0_54 = arith.constant 0 : index
    %c0_55 = arith.constant 0 : index
    %c0_56 = arith.constant 0 : index
    %124 = vector.load %arg16[%c0_54, %c0_55, %c0_56] : memref<1x8x32xf32, #tpu.memory_space<vmem>>, vector<1x8x32xf32>
    %125 = vector.shape_cast %124 : vector<1x8x32xf32> to vector<8x32xf32>
    %126 = vector.shape_cast %123 : vector<8x32xf32> to vector<1x8x32xf32>
    tpu.vector_store %arg16[%c0_54, %c0_55, %c0_56], %126 {strides = array<i32>} : memref<1x8x32xf32, #tpu.memory_space<vmem>>, vector<1x8x32xf32>,
    return
  }
  func.func @transform_0(%arg0: i32, %arg1: i32) -> (i32, i32, i32) {
    %c0_i32 = arith.constant 0 : i32
    %c0_i32_0 = arith.constant 0 : i32
    return %arg0, %arg1, %c0_i32 : i32, i32, i32
  }
  func.func @transform_1(%arg0: i32, %arg1: i32) -> (i32, i32) {
    %c0_i32 = arith.constant 0 : i32
    %c0_i32_0 = arith.constant 0 : i32
    %c0_i32_1 = arith.constant 0 : i32
    return %c0_i32, %c0_i32_0 : i32, i32
  }
  func.func @transform_2(%arg0: i32, %arg1: i32) -> (i32, i32) {
    %c0_i32 = arith.constant 0 : i32
    %c0_i32_0 = arith.constant 0 : i32
    %c0_i32_1 = arith.constant 0 : i32
    return %c0_i32, %c0_i32_0 : i32, i32
  }
  func.func @transform_3(%arg0: i32, %arg1: i32) -> (i32, i32) {
    %c0_i32 = arith.constant 0 : i32
    %c0_i32_0 = arith.constant 0 : i32
    %c0_i32_1 = arith.constant 0 : i32
    return %c0_i32, %c0_i32_0 : i32, i32
  }
  func.func @transform_4(%arg0: i32, %arg1: i32) -> (i32, i32) {
    %c0_i32 = arith.constant 0 : i32
    %c0_i32_0 = arith.constant 0 : i32
    %c0_i32_1 = arith.constant 0 : i32
    return %c0_i32, %c0_i32_0 : i32, i32
  }
  func.func @transform_5(%arg0: i32, %arg1: i32) -> (i32, i32) {
    %c0_i32 = arith.constant 0 : i32
    %c0_i32_0 = arith.constant 0 : i32
    %c0_i32_1 = arith.constant 0 : i32
    return %c0_i32, %c0_i32_0 : i32, i32
  }
  func.func @transform_6(%arg0: i32, %arg1: i32) -> (i32, i32) {
    %c0_i32 = arith.constant 0 : i32
    %c0_i32_0 = arith.constant 0 : i32
    %c0_i32_1 = arith.constant 0 : i32
    return %c0_i32, %c0_i32_0 : i32, i32
  }
  func.func @transform_7(%arg0: i32, %arg1: i32) -> (i32, i32) {
    %c0_i32 = arith.constant 0 : i32
    %c0_i32_0 = arith.constant 0 : i32
    %c0_i32_1 = arith.constant 0 : i32
    return %c0_i32, %c0_i32_0 : i32, i32
  }
  func.func @transform_8(%arg0: i32, %arg1: i32) -> (i32, i32) {
    %c0_i32 = arith.constant 0 : i32
    %c0_i32_0 = arith.constant 0 : i32
    %c0_i32_1 = arith.constant 0 : i32
    return %c0_i32, %c0_i32_0 : i32, i32
  }
  func.func @transform_9(%arg0: i32, %arg1: i32) -> (i32, i32) {
    %c0_i32 = arith.constant 0 : i32
    %c0_i32_0 = arith.constant 0 : i32
    %c0_i32_1 = arith.constant 0 : i32
    return %c0_i32, %c0_i32_0 : i32, i32
  }
  func.func @transform_10(%arg0: i32, %arg1: i32) -> (i32, i32) {
    %c0_i32 = arith.constant 0 : i32
    %c0_i32_0 = arith.constant 0 : i32
    %c0_i32_1 = arith.constant 0 : i32
    return %c0_i32, %c0_i32_0 : i32, i32
  }
  func.func @transform_11(%arg0: i32, %arg1: i32) -> (i32, i32) {
    %c0_i32 = arith.constant 0 : i32
    %c0_i32_0 = arith.constant 0 : i32
    %c0_i32_1 = arith.constant 0 : i32
    return %c0_i32, %c0_i32_0 : i32, i32
  }
  func.func @transform_12(%arg0: i32, %arg1: i32) -> (i32, i32) {
    %c0_i32 = arith.constant 0 : i32
    %c0_i32_0 = arith.constant 0 : i32
    %c0_i32_1 = arith.constant 0 : i32
    return %c0_i32, %c0_i32_0 : i32, i32
  }
  func.func @transform_13(%arg0: i32, %arg1: i32) -> (i32, i32) {
    %c0_i32 = arith.constant 0 : i32
    %c0_i32_0 = arith.constant 0 : i32
    %c0_i32_1 = arith.constant 0 : i32
    return %c0_i32, %c0_i32_0 : i32, i32
  }
  func.func @transform_14(%arg0: i32, %arg1: i32) -> (i32, i32, i32) {
    %c0_i32 = arith.constant 0 : i32
    %c0_i32_0 = arith.constant 0 : i32
    return %arg0, %arg1, %c0_i32 : i32, i32, i32
  }
}

</mosaic_0001>

<bundles_post_ra>
// kernel: tpu_custom_call.1
= control target key start
LH: loop header
LB: loop body
LE: loop exit
PB: predicated region body
PF: predicated region fallthrough
CT: control target
= control target key end

     0   :  { %s2378_s0 = inlined_call_operand.hbm [shape: f32[2,8,32], index: 0, kind: input, shape index: {}]   ;;  %s2379_s1 = inlined_call_operand.vmem [shape: f32[32,32], index: 1, kind: input, shape index: {}]   ;;  %s2380_s2 = inlined_call_operand.vmem [shape: f32[32,32], index: 2, kind: input, shape index: {}]   ;;  %s2381_s3 = inlined_call_operand.vmem [shape: f32[32,32], index: 3, kind: input, shape index: {}]   ;;  %s2382_s4 = inlined_call_operand.vmem [shape: f32[32,32], index: 4, kind: input, shape index: {}]   ;;  %s2383_s5 = inlined_call_operand.vmem [shape: f32[1,32], index: 5, kind: input, shape index: {}]   ;;  %s2384_s6 = inlined_call_operand.vmem [shape: f32[32,128], index: 6, kind: input, shape index: {}]   ;;  %s2385_s7 = inlined_call_operand.vmem [shape: f32[1,128], index: 7, kind: input, shape index: {}]   ;;  %s2386_s8 = inlined_call_operand.vmem [shape: f32[128,32], index: 8, kind: input, shape index: {}]   ;;  %s2387_s9 = inlined_call_operand.vmem [shape: f32[1,32], index: 9, kind: input, shape index: {}]   ;;  %s2388_s10 = inlined_call_operand.vmem [shape: f32[1,32], index: 10, kind: input, shape index: {}]   ;;  %s2389_s11 = inlined_call_operand.vmem [shape: f32[1,32], index: 11, kind: input, shape index: {}]   ;;  %s2390_s12 = inlined_call_operand.vmem [shape: f32[1,32], index: 12, kind: input, shape index: {}]   ;;  %s2391_s13 = inlined_call_operand.vmem [shape: f32[1,32], index: 13, kind: input, shape index: {}]   ;;  %s2392_s14 = inlined_call_operand.hbm [shape: f32[2,8,32], index: 14, kind: output, shape index: {}]  }
   0x1   :  { %2398 = sst [smem:[#allocation12_spill]] %s2378_s0 }
   0x2   :  { %2399 = sst [smem:[#allocation13_spill]] %s2379_s1 }
   0x3   :  { %2400 = sst [smem:[#allocation14_spill]] %s2391_s13 }
   0x4   :  { %2401 = sst [smem:[#allocation15_spill]] %s2392_s14 }
   0x5   :  { %19 = vsyncpa [#allocation3], 0 }
   0x6   :  { %21 = vsyncpa [#allocation3 + $0x1], 0 }
   0x7   :  { %22 = vsyncpa [#allocation4], 0 }
   0x8   :  { %24 = vsyncpa [#allocation4 + $0x1], 0  ;;  %s2001_s29 = smov 0   ;;  %s2003_s30 = smov 0  }
   0x9   :  { %s2005_s15 = smov 0   ;;  %s2007_s16 = smov 0  }
   0xa   :  { %s2009_s17 = smov 0   ;;  %s2011_s18 = smov 0  }
   0xb LB: > { %2402 = sst [smem:[#allocation8_spill]] %s1897_s29  ;;  %s1481_s19 = sadd.s32 4294967295, %s1917_s18   ;;  %s1917_s18 = sphi %s2011_s18, %s30_s18   ;;  %s1913_s17 = sphi %s2009_s17, %s2423_s17   ;;  %s1909_s16 = sphi %s2007_s16, %s2422_s16   ;;  %s1905_s15 = sphi %s2005_s15, %s2426_s15   ;;  %s1901_s30 = sphi %s2003_s30, %s2425_s30   ;;  %s1897_s29 = sphi %s2001_s29, %s2424_s29  }
   0xc   : > { %2403 = sst [smem:[#allocation9_spill]] %s1913_s17  ;;  %s1482_s20 = sadd.s32 4294967294, %s1917_s18  }
   0xd   : > { %s42_s21 = sadd.s32 1, %s1913_s17  ;;  %s51_s22 = sadd.s32 1, %s1905_s15 }
   0xe   : > { %p44_p0 = scmp.ge.s32.totalorder %s42_s21, 2  ;;  %p58_p1 = scmp.ne.s32.totalorder %s1905_s15, %s1901_s30 }
   0xf   : > { %p59_p2 = scmp.eq.s32.totalorder %s1917_s18, 0  ;;  %p64_p3 = scmp.ne.s32.totalorder %s1901_s30, %s1897_s29 }
  0x10   : > { %s2428_s21 = smov (%p44_p0, %s42_s21), 0  ;;  %p65_p5 = scmp.eq.s32.totalorder %s1481_s19, 0 }
  0x11   : > { %2404 = sst [smem:[#allocation10_spill]] %s2428_s21  ;;  %p2042_p4 = por %p59_p2, %p58_p1 }
  0x12   : > { %s46_s24 = ssub.s32 %s1913_s17, %s2428_s21  ;;  %p363_p6 = scmp.eq.s32.totalorder %s1481_s19, 1 }
  0x13   : > { %p49_p7 = scmp.eq.s32.totalorder %s46_s24, 0  ;;  %p2048_p8 = por %p65_p5, %p64_p3 }
  0x14   : > { %p2052_p9 = por %p363_p6, %p58_p1  ;;  %p369_p10 = scmp.eq.s32.totalorder %s1482_s20, 1 }
  0x15   : > { %s2057_s27 = scalar_select %p49_p7, %s1905_s15, %s51_s22  }
  0x16   : > { %s2407_s26 = scalar_select %p2052_p9, 1, 0 }
  0x17   : > { %2408 = sst [smem:[#allocation11_spill]] %s2057_s27  ;;  %p2059_p11 = por %p369_p10, %p64_p3 }
  0x18   : > { %p1738_p13 = scmp.lt.s32.totalorder %s1917_s18, 2  ;;  %s428_s19 = sand.u32 1, %s1905_s15  }
  0x19   : > { %s2409_s28 = scalar_select %p2059_p11, 1, 0 }
  0x1a   : > { %s1485_s24 = sshll.u32 %s428_s19, 3  ;;  %s1486_s21 = sshll.u32 %s1913_s17, 7 }
  0x1b   : > { %s2410_s0 = sld [smem:[#allocation12_spill]]  ;;  %s432_s20 = scalar_lea.vmem [#allocation2], %s1485_s24 }
  0x1c   : > { %s440_s22 = sshll.u32 %s432_s20, 4  ;;  %p2076_p0 = pnand %p1738_p13, %p2042_p4  ;;  %s2072_s22 = int_to_ptr.vmem [resolvable:$true] %s440_s22 }
  0x1d   : > { %s429_s14 = scalar_lea.sflag [#allocation3], %s428_s19 }
  0x1e   : > { %p1807_p5 = pneg %p2076_p0 }
  0x21   : > { %s2070_s13 = scalar_lea.hbm %s2410_s0, %s1486_s21  ;;  %s1810_s23 = scalar_lea.hbm %s2410_s0, 256 }
  0x22   : > { %s1805_s29 = scalar_lea.hbm %s2070_s13, 128  ;;  %p1811_p4 = scmp.lt.u32.totalorder %s2070_s13, %s2410_s0 }
  0x23   : > { %p1806_p3 = scmp.ne.s32.totalorder %s2070_s13, %s1805_s29  ;;  %p1812_p10 = scmp.lt.u32.totalorder %s1810_s23, %s1805_s29 }
  0x24   : > { %p1814_p12 = scmp.lt.u32.totalorder %s1805_s29, %s2070_s13 }
  0x25   : > { %p1808_p6 = pnand %p1807_p5, %p1806_p3  ;;  %p1813_p13 = por %p1812_p10, %p1811_p4 }
  0x27   : > { %p1809_p7 = pneg %p1808_p6  ;;  %p1815_p1 = por %p1814_p12, %p1813_p13 }
  0x29   : > { %p1816_p2 = pnand %p1815_p1, %p1809_p7 }
  0x2b   : > { %1819 = shalt.err (!%p1816_p2)
}
  0x2c   : > { %s1820_s19 = scalar_lea.vmem %s2072_s22, 128  ;;  %s1919_s21 = smov [#allocation2]  }
  0x2d   : > { %p1821_p3 = scmp.ne.s32.totalorder %s2072_s22, %s1820_s19  ;;  %s1825_s24 = sshll.u32 %s1919_s21, 4  ;;  %s1826_s24 = int_to_ptr.vmem [resolvable:$false] %s1825_s24 }
  0x2e   : > { %s1827_s17 = scalar_lea.vmem %s1826_s24, 256  ;;  %p1828_p9 = scmp.lt.s32.totalorder %s2072_s22, %s1826_s24 }
  0x2f   : > { %p1823_p6 = pnand %p1821_p3, %p1807_p5  ;;  %p1829_p4 = scmp.lt.s32.totalorder %s1827_s17, %s1820_s19 }
  0x31   : > { %p1824_p11 = pneg %p1823_p6  ;;  %p1830_p10 = por %p1829_p4, %p1828_p9 }
  0x33   : > { %p1831_p12 = pnand %p1830_p10, %p1824_p11 }
  0x35   : > { %1834 = shalt.err (!%p1831_p12)
}
  0x36   : > { %1733 = dma.hbm_to_vmem [thread:$0]  (!%p2076_p0), %s2070_s13, 128, %s2072_s22, %s429_s14  }
  0x37   : > { %p2412_p1 = scmp.lt.s32.totalorder %s1917_s18, 3  ;;  %p2413_p2 = scmp.ge.s32.totalorder %s1917_s18, 1 }
  0x39   : > { %p446_p5 = pnand %p2413_p2, %p2412_p1 }
  0x3a   : > { %s2112_s29 = sand.u32 (!%p446_p5), 1, %s1901_s30  }
  0x3b   : > { %449 = sbr.rel (%p446_p5) target bundleno = 2566 (0xa06), region = 76  ;;  %s1488_s23 = sshll.u32 (!%p446_p5), %s2112_s29, 3 }
  0x3c   : > { %s452_s20 = scalar_lea.sflag (!%p446_p5), [#allocation3], %s2112_s29  ;;  %s455_s27 = scalar_lea.vmem (!%p446_p5), [#allocation2], %s1488_s23 }
  0x42   : > { %1888 = dma.done.wait (%p2048_p8), %s452_s20, 128  }
  0x43   : > { %1890 = vsyncadd (%p2048_p8), %s452_s20, 4294967168  ;;  %v1920_v0 = vmov 0.0|0.0   ;;  %vm1921_vm0 = vmmov 0   ;;  %v1922_v1 = vmov 0.0   ;;  %s2414_s1 = sld [smem:[#allocation13_spill]]  ;;  %v586_v8 = vld [vmem:[%s2380_s2] sm:$0xff] }
  0x44   : > { %1672 = vmatprep.subr.bf16.mxu1 %v1920_v0  ;;  %1570 = vmatprep.mubr.msk.f32.mxu1 %vm1921_vm0, %v1922_v1  ;;  %v587_v9 = vld [vmem:[%s2380_s2 + $0x8] sm:$0xff]  ;;  %vm512_vm1 = vcmask 261120   ;;  %v588_v12 = vld [vmem:[%s2380_s2 + $0x10] sm:$0xff]  ;;  %v589_v13 = vld [vmem:[%s2380_s2 + $0x18] sm:$0xff]  ;;  %vm734_vm2 = vcmask 130048   ;;  %s1923_s21 = smov 112  }
  0x45   : > { %1605 = vmatprep.subr.mxu0 %v1922_v1  ;;  %1607 = vmatprep.mubr.msk.f32.mxu0 %vm1921_vm0, %v1922_v1  ;;  %v2147_v10 = vld [vmem:[%s455_s27] sm:$0xff]  ;;  %v1679_v11 = vpack.c.bf16 %v587_v9, %v586_v8  ;;  %v1682_v14 = vpack.c.bf16 %v589_v13, %v588_v12  ;;  %v662_v18 = vld [vmem:[%s2381_s3 + $0x10] sm:$0xff]  ;;  %v663_v19 = vld [vmem:[%s2381_s3 + $0x18] sm:$0xff]  ;;  %vm812_vm3 = vcmask 64512   ;;  %s1924_s19 = smov 16   ;;  %s2415_s20 = sld [smem:[#allocation14_spill]] }
  0x46   : > { %v660_v15 = vld [vmem:[%s2381_s3] sm:$0xff]  ;;  %v661_v16 = vld [vmem:[%s2381_s3 + $0x8] sm:$0xff]  ;;  %v1688_v20 = vpack.c.bf16 %v663_v19, %v662_v18  ;;  %v1071_v56 = vld [vmem:[%s2382_s4 + $0x10] sm:$0xff]  ;;  %s1509_s13 = sshll.u32 %s1909_s16, 7  ;;  %s499_s22 = scalar_lea.vmem [#allocation5], %s1488_s23 }
  0x47   : > { %v1685_v17 = vpack.c.bf16 %v661_v16, %v660_v15  ;;  %v1069_v54 = vld [vmem:[%s2382_s4] sm:$0xff]  ;;  %v1070_v55 = vld [vmem:[%s2382_s4 + $0x8] sm:$0xff]  ;;  %v1072_v58 = vld [vmem:[%s2382_s4 + $0x18] sm:$0xff]  ;;  %s1401_s14 = sshll.u32 %s499_s22, 4  ;;  %s2416_s0 = sld [smem:[#allocation15_spill]]  ;;  %s2330_s14 = int_to_ptr.vmem [resolvable:$true] %s1401_s14 }
  0x48   : > { %v1691_v57 = vpack.c.bf16 %v1070_v55, %v1069_v54  ;;  %v1694_v59 = vpack.c.bf16 %v1072_v58, %v1071_v56  ;;  %v1182_v16 = vld [vmem:[%s2384_s6 + $0x8] sm:$0xff]  ;;  %v1184_v18 = vld [vmem:[%s2384_s6 + $0x18] sm:$0xff]  ;;  %s1835_s24 = scalar_lea.vmem %s2330_s14, 128  ;;  %p2417_p9 = scmp.ne.s32.totalorder %s2407_s26, 0 }
  0x49   : > { %v508_v2 = vld [vmem:[%s2414_s1] sm:$0xff]  ;;  %v509_v3 = vld [vmem:[%s2414_s1 + $0x8] sm:$0xff]  ;;  %v510_v4 = vld [vmem:[%s2414_s1 + $0x10] sm:$0xff]  ;;  %p1836_p8 = scmp.ne.s32.totalorder %s2330_s14, %s1835_s24  ;;  %s1925_s16 = smov [#allocation5]  }
  0x4a   : > { %v1673_v5 = vpack.c.bf16 %v509_v3, %v508_v2  ;;  %v511_v6 = vld [vmem:[%s2414_s1 + $0x18] sm:$0xff]  ;;  %s1839_s23 = sshll.u32 %s1925_s16, 4  ;;  %s1840_s23 = int_to_ptr.vmem [resolvable:$false] %s1839_s23 }
  0x4b   : > { %v1676_v7 = vpack.c.bf16 %v511_v6, %v510_v4  ;;  %v1499_v4 = vld [vmem:[%s2383_s5] ss:$0 sm:$0xff]  ;;  %p1837_p11 = pnand %p1836_p8, %p2417_p9  ;;  %s1841_s27 = scalar_lea.vmem %s1840_s23, 256 }
  0x4c   : > { %1674 = vmatpush3.bf16.msra.mxu1 %v1673_v5  ;;  %p1842_p7 = scmp.lt.s32.totalorder %s2330_s14, %s1840_s23  ;;  %p1843_p13 = scmp.lt.s32.totalorder %s1841_s27, %s1835_s24 }
  0x4d   : > { %1675 = vmatprep.subr.bf16.mxu1 %v1920_v0  ;;  %s2328_s1 = scalar_lea.hbm %s2416_s0, %s1509_s13  ;;  %p1838_p0 = pneg %p1837_p11 }
  0x4e   : > { %p1844_p3 = por %p1843_p13, %p1842_p7 }
  0x50   : > { %1677 = vmatpush3.bf16.msra.mxu1 %v1676_v7  ;;  %p1845_p6 = pnand %p1844_p3, %p1838_p0 }
  0x51   : > { %1678 = vmatprep.subr.bf16.mxu1 %v1920_v0 }
  0x53   : > { %1571 = vmatmul.mubr.msk.f32.vlgmr.msra.gmra.mrb[0].mxu1 %vm512_vm1, %v2147_v10 }
  0x54   : > { %1680 = vmatpush3.bf16.msra.mxu1 %v1679_v11  ;;  %1581 = vmatprep.mubr.msk.f32.mxu1 %vm1921_vm0, %v1922_v1 }
  0x55   : > { %1681 = vmatprep.subr.bf16.mxu1 %v1920_v0 }
  0x58   : > { %1683 = vmatpush3.bf16.msra.mxu1 %v1682_v14 }
  0x59   : > { %1684 = vmatprep.subr.bf16.mxu1 %v1920_v0 }
  0x5b   : > { %1582 = vmatmul.mubr.msk.f32.vlgmr.msra.gmra.mrb[2].mxu1 %vm512_vm1, %v2147_v10 }
  0x5c   : > { %1686 = vmatpush3.bf16.msra.mxu1 %v1685_v17  ;;  %1592 = vmatprep.mubr.msk.f32.mxu1 %vm1921_vm0, %v1922_v1 }
  0x5d   : > { %1687 = vmatprep.subr.bf16.mxu1 %v1920_v0 }
  0x60   : > { %1689 = vmatpush3.bf16.msra.mxu1 %v1688_v20  ;;  %v1265_v20 = vld [vmem:[%s2386_s8] sm:$0xff] }
  0x61   : > { %1595 = vmatprep.subr.mxu1 %v1922_v1 }
  0x63   : > { %1593 = vmatmul.mubr.msk.f32.vlgmr.msra.gmra.mrb[4].mxu1 %vm512_vm1, %v2147_v10 }
  0x64   : > { %1597 = vmatprep.mubr.msk.f32.mxu1 %vm1921_vm0, %v1922_v1 }
 0x126   : > { %v582_v21 = vpop.f32.mrb[0].mxu1 }
 0x127   : > { %v1572_v22 = vpop.f32.mrb[1].mxu1 }
 0x128   : > { %v1267_v22 = vld [vmem:[%s2386_s8 + $0x10] sm:$0xff] }
 0x12e   : > { %v656_v23 = vpop.f32.mrb[2].mxu1 }
 0x12f   : > { %899 = vrot.lane.b32.xlu0 %v656_v23, %s1923_s21  ;;  %v1583_v24 = vpop.f32.mrb[3].mxu1  ;;  %1596 = vmatpush3.xpose.msk.msra.mxu1 %vm734_vm2, %v656_v23 }
 0x130   : > { %1600 = vmatprep.subr.mxu1 %v1922_v1  ;;  %v1268_v24 = vld [vmem:[%s2386_s8 + $0x18] sm:$0xff] }
 0x132   : > { %1598 = vmatmul.mubr.msk.f32.vlgmr.msra.gmra.mrb[6].mxu1 %vm734_vm2, %v582_v21 }
 0x133   : > { %897 = vrot.lane.b32.xlu0 %v582_v21, %s1923_s21  ;;  %1602 = vmatprep.mubr.msk.f32.mxu1 %vm1921_vm0, %v1922_v1  ;;  %v1266_v21 = vld [vmem:[%s2386_s8 + $0x8] sm:$0xff] }
 0x134   : > { %v1703_v23 = vpack.c.bf16 %v1266_v21, %v1265_v20 }
 0x136   : > { %v730_v25 = vpop.f32.mrb[4].mxu1 }
 0x137   : > { %v1594_v26 = vpop.f32.mrb[5].mxu1  ;;  %1601 = vmatpush3.msra.mxu1 %v730_v25 }
 0x138   : > { %1610 = vmatprep.subr.mxu1 %v1922_v1  ;;  %v1269_v26 = vld [vmem:[%s2386_s8 + $0x20] sm:$0xff] }
 0x1a1   : > { %v900_v27 = vpop.permute.xlu0 %899 }
 0x1a2   : > { %1606 = vmatpush3.xpose.msk.msra.mxu0 %vm734_vm2, %v900_v27  ;;  %v1270_v27 = vld [vmem:[%s2386_s8 + $0x28] sm:$0xff] }
 0x1a3   : > { %1690 = vmatprep.subr.bf16.mxu0 %v1920_v0 }
 0x1a5   : > { %v898_v28 = vpop.permute.xlu0 %897 }
 0x1a6   : > { %1608 = vmatmul.mubr.msk.f32.vlgmr.msra.gmra.mrb[0].mxu0 %vm734_vm2, %v898_v28  ;;  %v1709_v28 = vpack.c.bf16 %v1270_v27, %v1269_v26 }
 0x1a7   : > { %1623 = vmatprep.mubr.msk.f32.mxu0 %vm1921_vm0, %v1922_v1  ;;  %1692 = vmatpush3.bf16.msra.mxu0 %v1691_v57  ;;  %v1505_v57 = vld [vmem:[%s2387_s9] ss:$0 sm:$0xff] }
 0x1a8   : > { %1693 = vmatprep.subr.bf16.mxu0 %v1920_v0 }
 0x1ab   : > { %1695 = vmatpush3.bf16.msra.mxu0 %v1694_v59 }
 0x1ac   : > { %1702 = vmatprep.subr.bf16.mxu0 %v1920_v0 }
 0x205   : > { %v807_v29 = vpop.f32.mrb[6].mxu1 }
 0x206   : > { %v811_v30 = vmul.f32 4.0, %v807_v29  ;;  %v1599_v31 = vpop.f32.mrb[7].mxu1  ;;  %v1271_v29 = vld [vmem:[%s2386_s8 + $0x30] sm:$0xff] }
 0x208   : > { %v813_v32 = vsel %vm812_vm3, %v811_v30, -inf }
 0x209   : > { %814 = vmax.xlane.f32.xlu1 %v813_v32  ;;  %v1273_v32 = vld [vmem:[%s2386_s8 + $0x40] sm:$0xff] }
 0x279   : > { %v971_v33 = vpop.f32.mrb[0].mxu0 }
 0x27a   : > { %v975_v34 = vmul.f32 4.0, %v971_v33  ;;  %v1609_v35 = vpop.f32.mrb[1].mxu0  ;;  %v1274_v33 = vld [vmem:[%s2386_s8 + $0x48] sm:$0xff] }
 0x27b   : > { %v1275_v35 = vld [vmem:[%s2386_s8 + $0x50] sm:$0xff] }
 0x27c   : > { %v976_v36 = vsel %vm812_vm3, %v975_v34, -inf }
 0x27d   : > { %977 = vmax.xlane.f32.xlu1 %v976_v36  ;;  %v1276_v36 = vld [vmem:[%s2386_s8 + $0x58] sm:$0xff] }
 0x296   : > { %v815_v37 = vpop.xlane.xlu1 %814 }
 0x297   : > { %v816_v38 = vsub.f32 %v811_v30, %v815_v37  ;;  %v1272_v30 = vld [vmem:[%s2386_s8 + $0x38] sm:$0xff]  ;;  %v1718_v37 = vpack.c.bf16 %v1276_v36, %v1275_v35 }
 0x298   : > { %v1712_v31 = vpack.c.bf16 %v1272_v30, %v1271_v29 }
 0x299   : > { %v817_v39 = vmul.f32 1.442695, %v816_v38  ;;  %v1277_v38 = vld [vmem:[%s2386_s8 + $0x60] sm:$0xff] }
 0x29b   : > { %1793 = vpow2.f32 %v817_v39  ;;  %v1278_v39 = vld [vmem:[%s2386_s8 + $0x68] sm:$0xff] }
 0x2a5   : > { %v1794_v40 = vpop.eup %1793 }
 0x2a6   : > { %v819_v41 = vsel %vm812_vm3, %v1794_v40, 0.0 }
 0x2a7   : > { %820 = vadd.xlane.f32.xlu0 %v819_v41 }
 0x30a   : > { %v978_v42 = vpop.xlane.xlu1 %977 }
 0x30b   : > { %v979_v43 = vsub.f32 %v975_v34, %v978_v42  ;;  %v1715_v34 = vpack.c.bf16 %v1274_v33, %v1273_v32 }
 0x30d   : > { %v980_v44 = vmul.f32 1.442695, %v979_v43 }
 0x30f   : > { %1795 = vpow2.f32 %v980_v44 }
 0x319   : > { %v1796_v45 = vpop.eup %1795 }
 0x31a   : > { %v982_v46 = vsel %vm812_vm3, %v1796_v45, 0.0 }
 0x31b   : > { %983 = vadd.xlane.f32.xlu1 %v982_v46 }
 0x32c   : > { %988 = vrot.lane.b32.xlu1 %v730_v25, %s1923_s21  ;;  %v1706_v25 = vpack.c.bf16 %v1268_v24, %v1267_v22  ;;  %s1387_s21 = scalar_lea.sflag [#allocation4], %s2112_s29 }
 0x334   : > { %v821_v47 = vpop.xlane.xlu0 %820 }
 0x335   : > { %1797 = vrcp.f32 %v821_v47  ;;  %v1502_v47 = vld [vmem:[%s2389_s11] ss:$0 sm:$0xff] }
 0x33f   : > { %v1798_v48 = vpop.eup %1797 }
 0x340   : > { %v823_v49 = vmul.f32 %v1798_v48, %v1794_v40  ;;  %v1721_v40 = vpack.c.bf16 %v1278_v39, %v1277_v38 }
 0x342   : > { %1603 = vmatmul.mubr.msk.f32.vlgmr.msra.gmra.mrb[8].mxu1 %vm812_vm3, %v823_v49 }
 0x343   : > { %1612 = vmatprep.mubr.msk.f32.mxu1 %vm1921_vm0, %v1922_v1 }
 0x3a8   : > { %v984_v50 = vpop.xlane.xlu1 %983 }
 0x3a9   : > { %1799 = vrcp.f32 %v984_v50  ;;  %v1280_v50 = vld [vmem:[%s2386_s8 + $0x78] sm:$0xff] }
 0x3ac   : > { %v989_v51 = vpop.permute.xlu1 %988 }
 0x3ad   : > { %1611 = vmatpush3.msra.mxu1 %v989_v51 }
 0x3ae   : > { %1696 = vmatprep.subr.bf16.mxu1 %v1920_v0 }
 0x3b3   : > { %v1800_v52 = vpop.eup %1799 }
 0x3b4   : > { %v986_v53 = vmul.f32 %v1800_v52, %v1796_v45  ;;  %v1501_v45 = vld [vmem:[%s2388_s10] ss:$0 sm:$0xff] }
 0x3b5   : > { %v1503_v52 = vld [vmem:[%s2385_s7] ss:$0 sm:$0xff] }
 0x3b6   : > { %1613 = vmatmul.mubr.msk.f32.vlgmr.msra.gmra.mrb[10].mxu1 %vm812_vm3, %v986_v53 }
 0x3b7   : > { %1634 = vmatprep.mubr.msk.f32.mxu1 %vm1921_vm0, %v1922_v1 }
 0x415   : > { %v893_v60 = vpop.f32.mrb[8].mxu1 }
 0x416   : > { %v1604_v61 = vpop.f32.mrb[9].mxu1 }
 0x489   : > { %v1060_v62 = vpop.f32.mrb[10].mxu1 }
 0x48a   : > { %1065 = vrot.lane.b32.xlu1 %v1060_v62, %s1924_s19  ;;  %v1614_v63 = vpop.f32.mrb[11].mxu1 }
 0x4fc   : > { %v1066_v2 = vpop.permute.xlu1 %1065 }
 0x4fd   : > { %v1068_v3 = vsel %vm734_vm2, %v893_v60, %v1066_v2 }
 0x4fe   : > { %1624 = vmatmul.mubr.msk.f32.vlgmr.msra.gmra.mrb[2].mxu0 %vm512_vm1, %v1068_v3 }
 0x4ff   : > { %1669 = vmatprep.mubr.msk.f32.mxu0 %vm1921_vm0, %v1922_v1  ;;  %v1181_v1 = vld [vmem:[%s2384_s6] sm:$0xff]  ;;  %1704 = vmatpush3.bf16.msra.mxu0 %v1703_v23 }
 0x500   : > { %v1697_v17 = vpack.c.bf16 %v1182_v16, %v1181_v1  ;;  %1705 = vmatprep.subr.bf16.mxu0 %v1920_v0 }
 0x502   : > { %1698 = vmatpush3.bf16.msra.mxu1 %v1697_v17 }
 0x503   : > { %1699 = vmatprep.subr.bf16.mxu1 %v1920_v0  ;;  %1707 = vmatpush3.bf16.msra.mxu0 %v1706_v25 }
 0x504   : > { %1708 = vmatprep.subr.bf16.mxu0 %v1920_v0 }
 0x507   : > { %1710 = vmatpush3.bf16.msra.mxu0 %v1709_v28 }
 0x508   : > { %1711 = vmatprep.subr.bf16.mxu0 %v1920_v0 }
 0x50b   : > { %1713 = vmatpush3.bf16.msra.mxu0 %v1712_v31 }
 0x50c   : > { %1714 = vmatprep.subr.bf16.mxu0 %v1920_v0 }
 0x50f   : > { %1716 = vmatpush3.bf16.msra.mxu0 %v1715_v34 }
 0x510   : > { %1717 = vmatprep.subr.bf16.mxu0 %v1920_v0 }
 0x513   : > { %1719 = vmatpush3.bf16.msra.mxu0 %v1718_v37 }
 0x514   : > { %1720 = vmatprep.subr.bf16.mxu0 %v1920_v0 }
 0x517   : > { %1722 = vmatpush3.bf16.msra.mxu0 %v1721_v40 }
 0x518   : > { %1723 = vmatprep.subr.bf16.mxu0 %v1920_v0  ;;  %v1279_v0 = vld [vmem:[%s2386_s8 + $0x70] sm:$0xff] }
 0x519   : > { %v1724_v51 = vpack.c.bf16 %v1280_v50, %v1279_v0 }
 0x51b   : > { %1725 = vmatpush3.bf16.msra.mxu0 %v1724_v51 }
 0x5d1   : > { %v1148_v5 = vpop.f32.mrb[2].mxu0 }
 0x5d2   : > { %v1149_v6 = vadd.f32 %v1499_v4, %v1148_v5  ;;  %v1625_v7 = vpop.f32.mrb[3].mxu0 }
 0x5d4   : > { %v1152_v8 = vadd.f32 %v1149_v6, %v2147_v10  ;;  %v1183_v10 = vld [vmem:[%s2384_s6 + $0x10] sm:$0xff] }
 0x5d5   : > { %v1700_v19 = vpack.c.bf16 %v1184_v18, %v1183_v10 }
 0x5d6   : > { %v1153_v9 = vsel %vm512_vm1, %v1152_v8, 0.0 }
 0x5d7   : > { %1154 = vadd.xlane.f32.xlu1 %v1153_v9  ;;  %1701 = vmatpush3.bf16.msra.mxu1 %v1700_v19 }
 0x664   : > { %v1155_v11 = vpop.xlane.xlu1 %1154 }
 0x665   : > { %v1157_v12 = vmul.f32 0.03125, %v1155_v11  ;;  %v1506_v11 = vld [vmem:[%s2390_s12] ss:$0 sm:$0xff] }
 0x667   : > { %v1158_v13 = vsub.f32 %v1152_v8, %v1157_v12 }
 0x669   : > { %v1159_v14 = vmul.f32 %v1158_v13, %v1158_v13 }
 0x66b   : > { %v1160_v15 = vsel %vm512_vm1, %v1159_v14, 0.0 }
 0x66c   : > { %1161 = vadd.xlane.f32.xlu0 %v1160_v15 }
 0x6f9   : > { %v1162_v41 = vpop.xlane.xlu0 %1161 }
 0x6fa   : > { %v1163_v42 = vmul.f32 0.03125, %v1162_v41 }
 0x6fc   : > { %v1164_v43 = vadd.f32 1e-05, %v1163_v42 }
 0x6fe   : > { %1801 = vrsqrt.f32 %v1164_v43 }
 0x708   : > { %v1802_v44 = vpop.eup %1801 }
 0x709   : > { %v1166_v46 = vmul.f32 %v1802_v44, %v1158_v13  ;;  %v1507_v13 = vld [vmem:[%s2415_s20] ss:$0 sm:$0xff] }
 0x70b   : > { %v1173_v48 = vmul.f32 %v1501_v45, %v1166_v46 }
 0x70d   : > { %v1180_v49 = vadd.f32 %v1502_v47, %v1173_v48 }
 0x70f   : > { %1635 = vmatmul.mubr.msk.f32.vlgmr.msra.gmra.mrb[12].mxu1 %vm512_vm1, %v1180_v49 }
 0x7e2   : > { %v1260_v53 = vpop.f32.mrb[12].mxu1 }
 0x7e3   : > { %v1261_v54 = vadd.f32 %v1503_v52, %v1260_v53  ;;  %v1636_v55 = vpop.f32.mrb[13].mxu1 }
 0x7e5   : > { %v1264_v56 = vmax.f32 %v1261_v54, 0.0 }
 0x7e7   : > { %1670 = vmatmul.mubr.f32.vlgmr.msra.gmra.mrb[4].mxu0 %v1264_v56 }
 0x8ba   : > { %v1353_v58 = vpop.f32.mrb[4].mxu0 }
 0x8bb   : > { %v1354_v59 = vadd.f32 %v1505_v57, %v1353_v58  ;;  %v1671_v60 = vpop.f32.mrb[5].mxu0 }
 0x8bd   : > { %v1357_v61 = vadd.f32 %v1354_v59, %v1180_v49 }
 0x8bf   : > { %v1358_v62 = vsel %vm512_vm1, %v1357_v61, 0.0 }
 0x8c0   : > { %1359 = vadd.xlane.f32.xlu0 %v1358_v62 }
 0x94d   : > { %v1360_v63 = vpop.xlane.xlu0 %1359 }
 0x94e   : > { %v1361_v2 = vmul.f32 0.03125, %v1360_v63 }
 0x950   : > { %v1362_v3 = vsub.f32 %v1357_v61, %v1361_v2 }
 0x952   : > { %v1363_v4 = vmul.f32 %v1362_v3, %v1362_v3 }
 0x954   : > { %v1364_v5 = vsel %vm512_vm1, %v1363_v4, 0.0 }
 0x955   : > { %1365 = vadd.xlane.f32.xlu0 %v1364_v5 }
 0x9e2   : > { %v1366_v6 = vpop.xlane.xlu0 %1365 }
 0x9e3   : > { %v1367_v7 = vmul.f32 0.03125, %v1366_v6 }
 0x9e5   : > { %v1368_v8 = vadd.f32 1e-05, %v1367_v7 }
 0x9e7   : > { %1803 = vrsqrt.f32 %v1368_v8 }
 0x9f1   : > { %v1804_v9 = vpop.eup %1803 }
 0x9f2   : > { %v1370_v12 = vmul.f32 %v1804_v9, %v1362_v3 }
 0x9f4   : > { %v1377_v14 = vmul.f32 %v1506_v11, %v1370_v12 }
 0x9f6   : > { %v1384_v15 = vadd.f32 %v1507_v13, %v1377_v14 }
 0x9f8   : > { %1385 = vst.msk [vmem:[%s499_s22] sm:$0xff] %vm512_vm1, %v1384_v15 }
 0x9f9   : > { %1848 = shalt.err (!%p1845_p6)
}
 0x9fa   : > { %s1849_s29 = scalar_lea.hbm %s2328_s1, 128  ;;  %s1853_s13 = scalar_lea.hbm %s2416_s0, 256 }
 0x9fb   : > { %p1850_p4 = scmp.ne.s32.totalorder %s2328_s1, %s1849_s29  ;;  %p1854_p1 = scmp.lt.u32.totalorder %s2328_s1, %s2416_s0 }
 0x9fc   : > { %p1855_p2 = scmp.lt.u32.totalorder %s1853_s13, %s1849_s29  ;;  %p1857_p8 = scmp.lt.u32.totalorder %s1849_s29, %s2328_s1 }
 0x9fd   : > { %p1851_p10 = pnand %p1850_p4, %p2417_p9 }
 0x9fe   : > { %p1856_p5 = por %p1855_p2, %p1854_p1 }
 0x9ff   : > { %p1852_p12 = pneg %p1851_p10 }
 0xa00   : > { %p1858_p11 = por %p1857_p8, %p1856_p5 }
 0xa02   : > { %p1859_p0 = pnand %p1858_p11, %p1852_p12 }
 0xa04   : > { %1862 = shalt.err (!%p1859_p0)
}
 0xa05   : > { %1728 = dma.vmem_to_hbm [thread:$0]  (%p2417_p9), %s2330_s14, 128, %s2328_s1, %s1387_s21  }
 0xa06 PF: > { %s2418_s19 = sld [smem:[#allocation8_spill]]  ;;  %p2419_p7 = scmp.ne.s32.totalorder %s2409_s28, 0 }
 0xa07   : > { %p2420_p13 = scmp.ge.s32.totalorder %s1917_s18, 2 }
 0xa09   : > { %p1735_p3 = pnand %p2420_p13, %p2419_p7 }
 0xa0c   : > { %s1413_s24 = sand.u32 1, %s2418_s19  }
 0xa0d   : > { %s1414_s16 = scalar_lea.sflag [#allocation4], %s1413_s24 }
 0xa0e   : > { %1892 = dma.done.wait (!%p1735_p3), %s1414_s16, 128  }
 0xa0f   : > { %1894 = vsyncadd (!%p1735_p3), %s1414_s16, 4294967168  ;;  %s30_s18 = sadd.s32 1, %s1917_s18   ;;  %s2421_s26 = sld [smem:[#allocation11_spill]] }
 0xa10   : > { %p27_p6 = scmp.ge.s32.totalorder %s30_s18, 4   ;;  %s2422_s16 = sld [smem:[#allocation9_spill]] }
 0xa11   : > { %s2423_s17 = sld [smem:[#allocation10_spill]]  ;;  %s2424_s29 = smov %s1901_s30 }
 0xa12   : > { %s2425_s30 = smov %s1905_s15  ;;  %29 = sbr.rel (!%p27_p6) target bundleno = 11 (0xb), region = 121 }
 0xa15   : > { %s2426_s15 = smov %s2421_s26 }
 0xa19   :  { %1419 = vsyncpa [#allocation3], 1 }
 0xa1a   :  { %1421 = vsyncpa [#allocation3 + $0x1], 1 }
 0xa1b   :  { %1422 = vsyncpa [#allocation4], 1 }
 0xa1c   :  { %1424 = vsyncpa [#allocation4 + $0x1], 1 }

// kernel: tpu_custom_call.1
= control target key start
LH: loop header
LB: loop body
LE: loop exit
PB: predicated region body
PF: predicated region fallthrough
CT: control target
= control target key end

     0   :  { %s2378_s0 = inlined_call_operand.hbm [shape: f32[2,8,32], index: 0, kind: input, shape index: {}]   ;;  %s2379_s1 = inlined_call_operand.vmem [shape: f32[32,32], index: 1, kind: input, shape index: {}]   ;;  %s2380_s2 = inlined_call_operand.vmem [shape: f32[32,32], index: 2, kind: input, shape index: {}]   ;;  %s2381_s3 = inlined_call_operand.vmem [shape: f32[32,32], index: 3, kind: input, shape index: {}]   ;;  %s2382_s4 = inlined_call_operand.vmem [shape: f32[32,32], index: 4, kind: input, shape index: {}]   ;;  %s2383_s5 = inlined_call_operand.vmem [shape: f32[1,32], index: 5, kind: input, shape index: {}]   ;;  %s2384_s6 = inlined_call_operand.vmem [shape: f32[32,128], index: 6, kind: input, shape index: {}]   ;;  %s2385_s7 = inlined_call_operand.vmem [shape: f32[1,128], index: 7, kind: input, shape index: {}]   ;;  %s2386_s8 = inlined_call_operand.vmem [shape: f32[128,32], index: 8, kind: input, shape index: {}]   ;;  %s2387_s9 = inlined_call_operand.vmem [shape: f32[1,32], index: 9, kind: input, shape index: {}]   ;;  %s2388_s10 = inlined_call_operand.vmem [shape: f32[1,32], index: 10, kind: input, shape index: {}]   ;;  %s2389_s11 = inlined_call_operand.vmem [shape: f32[1,32], index: 11, kind: input, shape index: {}]   ;;  %s2390_s12 = inlined_call_operand.vmem [shape: f32[1,32], index: 12, kind: input, shape index: {}]   ;;  %s2391_s13 = inlined_call_operand.vmem [shape: f32[1,32], index: 13, kind: input, shape index: {}]   ;;  %s2392_s14 = inlined_call_operand.hbm [shape: f32[2,8,32], index: 14, kind: output, shape index: {}]  }
   0x1   :  { %2398 = sst [smem:[#allocation12_spill]] %s2378_s0 }
   0x2   :  { %2399 = sst [smem:[#allocation13_spill]] %s2379_s1 }
   0x3   :  { %2400 = sst [smem:[#allocation14_spill]] %s2391_s13 }
   0x4   :  { %2401 = sst [smem:[#allocation15_spill]] %s2392_s14 }
   0x5   :  { %19 = vsyncpa [#allocation3], 0 }
   0x6   :  { %21 = vsyncpa [#allocation3 + $0x1], 0 }
   0x7   :  { %22 = vsyncpa [#allocation4], 0 }
   0x8   :  { %24 = vsyncpa [#allocation4 + $0x1], 0  ;;  %s2001_s29 = smov 0   ;;  %s2003_s30 = smov 0  }
   0x9   :  { %s2005_s15 = smov 0   ;;  %s2007_s16 = smov 0  }
   0xa   :  { %s2009_s17 = smov 0   ;;  %s2011_s18 = smov 0  }
   0xb LB: > { %2402 = sst [smem:[#allocation8_spill]] %s1897_s29  ;;  %s1481_s19 = sadd.s32 4294967295, %s1917_s18   ;;  %s1917_s18 = sphi %s2011_s18, %s30_s18   ;;  %s1913_s17 = sphi %s2009_s17, %s2423_s17   ;;  %s1909_s16 = sphi %s2007_s16, %s2422_s16   ;;  %s1905_s15 = sphi %s2005_s15, %s2426_s15   ;;  %s1901_s30 = sphi %s2003_s30, %s2425_s30   ;;  %s1897_s29 = sphi %s2001_s29, %s2424_s29  }
   0xc   : > { %2403 = sst [smem:[#allocation9_spill]] %s1913_s17  ;;  %s1482_s20 = sadd.s32 4294967294, %s1917_s18  }
   0xd   : > { %s42_s21 = sadd.s32 1, %s1913_s17  ;;  %s51_s22 = sadd.s32 1, %s1905_s15 }
   0xe   : > { %p44_p0 = scmp.ge.s32.totalorder %s42_s21, 2  ;;  %p58_p1 = scmp.ne.s32.totalorder %s1905_s15, %s1901_s30 }
   0xf   : > { %p59_p2 = scmp.eq.s32.totalorder %s1917_s18, 0  ;;  %p64_p3 = scmp.ne.s32.totalorder %s1901_s30, %s1897_s29 }
  0x10   : > { %s2428_s21 = smov (%p44_p0, %s42_s21), 0  ;;  %p65_p5 = scmp.eq.s32.totalorder %s1481_s19, 0 }
  0x11   : > { %2404 = sst [smem:[#allocation10_spill]] %s2428_s21  ;;  %p2042_p4 = por %p59_p2, %p58_p1 }
  0x12   : > { %s46_s24 = ssub.s32 %s1913_s17, %s2428_s21  ;;  %p363_p6 = scmp.eq.s32.totalorder %s1481_s19, 1 }
  0x13   : > { %p49_p7 = scmp.eq.s32.totalorder %s46_s24, 0  ;;  %p2048_p8 = por %p65_p5, %p64_p3 }
  0x14   : > { %p2052_p9 = por %p363_p6, %p58_p1  ;;  %p369_p10 = scmp.eq.s32.totalorder %s1482_s20, 1 }
  0x15   : > { %s2057_s27 = scalar_select %p49_p7, %s1905_s15, %s51_s22  }
  0x16   : > { %s2407_s26 = scalar_select %p2052_p9, 1, 0 }
  0x17   : > { %2408 = sst [smem:[#allocation11_spill]] %s2057_s27  ;;  %p2059_p11 = por %p369_p10, %p64_p3 }
  0x18   : > { %p1738_p13 = scmp.lt.s32.totalorder %s1917_s18, 2  ;;  %s428_s19 = sand.u32 1, %s1905_s15  }
  0x19   : > { %s2409_s28 = scalar_select %p2059_p11, 1, 0 }
  0x1a   : > { %s1485_s24 = sshll.u32 %s428_s19, 3  ;;  %s1486_s21 = sshll.u32 %s1913_s17, 7 }
  0x1b   : > { %s2410_s0 = sld [smem:[#allocation12_spill]]  ;;  %s432_s20 = scalar_lea.vmem [#allocation2], %s1485_s24 }
  0x1c   : > { %s440_s22 = sshll.u32 %s432_s20, 4  ;;  %p2076_p0 = pnand %p1738_p13, %p2042_p4  ;;  %s2072_s22 = int_to_ptr.vmem [resolvable:$true] %s440_s22 }
  0x1d   : > { %s429_s14 = scalar_lea.sflag [#allocation3], %s428_s19 }
  0x1e   : > { %p1807_p5 = pneg %p2076_p0 }
  0x21   : > { %s2070_s13 = scalar_lea.hbm %s2410_s0, %s1486_s21  ;;  %s1810_s23 = scalar_lea.hbm %s2410_s0, 256 }
  0x22   : > { %s1805_s29 = scalar_lea.hbm %s2070_s13, 128  ;;  %p1811_p4 = scmp.lt.u32.totalorder %s2070_s13, %s2410_s0 }
  0x23   : > { %p1806_p3 = scmp.ne.s32.totalorder %s2070_s13, %s1805_s29  ;;  %p1812_p10 = scmp.lt.u32.totalorder %s1810_s23, %s1805_s29 }
  0x24   : > { %p1814_p12 = scmp.lt.u32.totalorder %s1805_s29, %s2070_s13 }
  0x25   : > { %p1808_p6 = pnand %p1807_p5, %p1806_p3  ;;  %p1813_p13 = por %p1812_p10, %p1811_p4 }
  0x27   : > { %p1809_p7 = pneg %p1808_p6  ;;  %p1815_p1 = por %p1814_p12, %p1813_p13 }
  0x29   : > { %p1816_p2 = pnand %p1815_p1, %p1809_p7 }
  0x2b   : > { %1819 = shalt.err (!%p1816_p2)
}
  0x2c   : > { %s1820_s19 = scalar_lea.vmem %s2072_s22, 128  ;;  %s1919_s21 = smov [#allocation2]  }
  0x2d   : > { %p1821_p3 = scmp.ne.s32.totalorder %s2072_s22, %s1820_s19  ;;  %s1825_s24 = sshll.u32 %s1919_s21, 4  ;;  %s1826_s24 = int_to_ptr.vmem [resolvable:$false] %s1825_s24 }
  0x2e   : > { %s1827_s17 = scalar_lea.vmem %s1826_s24, 256  ;;  %p1828_p9 = scmp.lt.s32.totalorder %s2072_s22, %s1826_s24 }
  0x2f   : > { %p1823_p6 = pnand %p1821_p3, %p1807_p5  ;;  %p1829_p4 = scmp.lt.s32.totalorder %s1827_s17, %s1820_s19 }
  0x31   : > { %p1824_p11 = pneg %p1823_p6  ;;  %p1830_p10 = por %p1829_p4, %p1828_p9 }
  0x33   : > { %p1831_p12 = pnand %p1830_p10, %p1824_p11 }
  0x35   : > { %1834 = shalt.err (!%p1831_p12)
}
  0x36   : > { %1733 = dma.hbm_to_vmem [thread:$0]  (!%p2076_p0), %s2070_s13, 128, %s2072_s22, %s429_s14  }
  0x37   : > { %p2412_p1 = scmp.lt.s32.totalorder %s1917_s18, 3  ;;  %p2413_p2 = scmp.ge.s32.totalorder %s1917_s18, 1 }
  0x39   : > { %p446_p5 = pnand %p2413_p2, %p2412_p1 }
  0x3a   : > { %s2112_s29 = sand.u32 (!%p446_p5), 1, %s1901_s30  }
  0x3b   : > { %449 = sbr.rel (%p446_p5) target bundleno = 2566 (0xa06), region = 76  ;;  %s1488_s23 = sshll.u32 (!%p446_p5), %s2112_s29, 3 }
  0x3c   : > { %s452_s20 = scalar_lea.sflag (!%p446_p5), [#allocation3], %s2112_s29  ;;  %s455_s27 = scalar_lea.vmem (!%p446_p5), [#allocation2], %s1488_s23 }
  0x42   : > { %1888 = dma.done.wait (%p2048_p8), %s452_s20, 128  }
  0x43   : > { %1890 = vsyncadd (%p2048_p8), %s452_s20, 4294967168  ;;  %v1920_v0 = vmov 0.0|0.0   ;;  %vm1921_vm0 = vmmov 0   ;;  %v1922_v1 = vmov 0.0   ;;  %s2414_s1 = sld [smem:[#allocation13_spill]]  ;;  %v586_v8 = vld [vmem:[%s2380_s2] sm:$0xff] }
  0x44   : > { %1672 = vmatprep.subr.bf16.mxu1 %v1920_v0  ;;  %1570 = vmatprep.mubr.msk.f32.mxu1 %vm1921_vm0, %v1922_v1  ;;  %v587_v9 = vld [vmem:[%s2380_s2 + $0x8] sm:$0xff]  ;;  %vm512_vm1 = vcmask 261120   ;;  %v588_v12 = vld [vmem:[%s2380_s2 + $0x10] sm:$0xff]  ;;  %v589_v13 = vld [vmem:[%s2380_s2 + $0x18] sm:$0xff]  ;;  %vm734_vm2 = vcmask 130048   ;;  %s1923_s21 = smov 112  }
  0x45   : > { %1605 = vmatprep.subr.mxu0 %v1922_v1  ;;  %1607 = vmatprep.mubr.msk.f32.mxu0 %vm1921_vm0, %v1922_v1  ;;  %v2147_v10 = vld [vmem:[%s455_s27] sm:$0xff]  ;;  %v1679_v11 = vpack.c.bf16 %v587_v9, %v586_v8  ;;  %v1682_v14 = vpack.c.bf16 %v589_v13, %v588_v12  ;;  %v662_v18 = vld [vmem:[%s2381_s3 + $0x10] sm:$0xff]  ;;  %v663_v19 = vld [vmem:[%s2381_s3 + $0x18] sm:$0xff]  ;;  %vm812_vm3 = vcmask 64512   ;;  %s1924_s19 = smov 16   ;;  %s2415_s20 = sld [smem:[#allocation14_spill]] }
  0x46   : > { %v660_v15 = vld [vmem:[%s2381_s3] sm:$0xff]  ;;  %v661_v16 = vld [vmem:[%s2381_s3 + $0x8] sm:$0xff]  ;;  %v1688_v20 = vpack.c.bf16 %v663_v19, %v662_v18  ;;  %v1071_v56 = vld [vmem:[%s2382_s4 + $0x10] sm:$0xff]  ;;  %s1509_s13 = sshll.u32 %s1909_s16, 7  ;;  %s499_s22 = scalar_lea.vmem [#allocation5], %s1488_s23 }
  0x47   : > { %v1685_v17 = vpack.c.bf16 %v661_v16, %v660_v15  ;;  %v1069_v54 = vld [vmem:[%s2382_s4] sm:$0xff]  ;;  %v1070_v55 = vld [vmem:[%s2382_s4 + $0x8] sm:$0xff]  ;;  %v1072_v58 = vld [vmem:[%s2382_s4 + $0x18] sm:$0xff]  ;;  %s1401_s14 = sshll.u32 %s499_s22, 4  ;;  %s2416_s0 = sld [smem:[#allocation15_spill]]  ;;  %s2330_s14 = int_to_ptr.vmem [resolvable:$true] %s1401_s14 }
  0x48   : > { %v1691_v57 = vpack.c.bf16 %v1070_v55, %v1069_v54  ;;  %v1694_v59 = vpack.c.bf16 %v1072_v58, %v1071_v56  ;;  %v1182_v16 = vld [vmem:[%s2384_s6 + $0x8] sm:$0xff]  ;;  %v1184_v18 = vld [vmem:[%s2384_s6 + $0x18] sm:$0xff]  ;;  %s1835_s24 = scalar_lea.vmem %s2330_s14, 128  ;;  %p2417_p9 = scmp.ne.s32.totalorder %s2407_s26, 0 }
  0x49   : > { %v508_v2 = vld [vmem:[%s2414_s1] sm:$0xff]  ;;  %v509_v3 = vld [vmem:[%s2414_s1 + $0x8] sm:$0xff]  ;;  %v510_v4 = vld [vmem:[%s2414_s1 + $0x10] sm:$0xff]  ;;  %p1836_p8 = scmp.ne.s32.totalorder %s2330_s14, %s1835_s24  ;;  %s1925_s16 = smov [#allocation5]  }
  0x4a   : > { %v1673_v5 = vpack.c.bf16 %v509_v3, %v508_v2  ;;  %v511_v6 = vld [vmem:[%s2414_s1 + $0x18] sm:$0xff]  ;;  %s1839_s23 = sshll.u32 %s1925_s16, 4  ;;  %s1840_s23 = int_to_ptr.vmem [resolvable:$false] %s1839_s23 }
  0x4b   : > { %v1676_v7 = vpack.c.bf16 %v511_v6, %v510_v4  ;;  %v1499_v4 = vld [vmem:[%s2383_s5] ss:$0 sm:$0xff]  ;;  %p1837_p11 = pnand %p1836_p8, %p2417_p9  ;;  %s1841_s27 = scalar_lea.vmem %s1840_s23, 256 }
  0x4c   : > { %1674 = vmatpush3.bf16.msra.mxu1 %v1673_v5  ;;  %p1842_p7 = scmp.lt.s32.totalorder %s2330_s14, %s1840_s23  ;;  %p1843_p13 = scmp.lt.s32.totalorder %s1841_s27, %s1835_s24 }
  0x4d   : > { %1675 = vmatprep.subr.bf16.mxu1 %v1920_v0  ;;  %s2328_s1 = scalar_lea.hbm %s2416_s0, %s1509_s13  ;;  %p1838_p0 = pneg %p1837_p11 }
  0x4e   : > { %p1844_p3 = por %p1843_p13, %p1842_p7 }
  0x50   : > { %1677 = vmatpush3.bf16.msra.mxu1 %v1676_v7  ;;  %p1845_p6 = pnand %p1844_p3, %p1838_p0 }
  0x51   : > { %1678 = vmatprep.subr.bf16.mxu1 %v1920_v0 }
  0x53   : > { %1571 = vmatmul.mubr.msk.f32.vlgmr.msra.gmra.mrb[0].mxu1 %vm512_vm1, %v2147_v10 }
  0x54   : > { %1680 = vmatpush3.bf16.msra.mxu1 %v1679_v11  ;;  %1581 = vmatprep.mubr.msk.f32.mxu1 %vm1921_vm0, %v1922_v1 }
  0x55   : > { %1681 = vmatprep.subr.bf16.mxu1 %v1920_v0 }
  0x58   : > { %1683 = vmatpush3.bf16.msra.mxu1 %v1682_v14 }
  0x59   : > { %1684 = vmatprep.subr.bf16.mxu1 %v1920_v0 }
  0x5b   : > { %1582 = vmatmul.mubr.msk.f32.vlgmr.msra.gmra.mrb[2].mxu1 %vm512_vm1, %v2147_v10 }
  0x5c   : > { %1686 = vmatpush3.bf16.msra.mxu1 %v1685_v17  ;;  %1592 = vmatprep.mubr.msk.f32.mxu1 %vm1921_vm0, %v1922_v1 }
  0x5d   : > { %1687 = vmatprep.subr.bf16.mxu1 %v1920_v0 }
  0x60   : > { %1689 = vmatpush3.bf16.msra.mxu1 %v1688_v20  ;;  %v1265_v20 = vld [vmem:[%s2386_s8] sm:$0xff] }
  0x61   : > { %1595 = vmatprep.subr.mxu1 %v1922_v1 }
  0x63   : > { %1593 = vmatmul.mubr.msk.f32.vlgmr.msra.gmra.mrb[4].mxu1 %vm512_vm1, %v2147_v10 }
  0x64   : > { %1597 = vmatprep.mubr.msk.f32.mxu1 %vm1921_vm0, %v1922_v1 }
 0x126   : > { %v582_v21 = vpop.f32.mrb[0].mxu1 }
 0x127   : > { %v1572_v22 = vpop.f32.mrb[1].mxu1 }
 0x128   : > { %v1267_v22 = vld [vmem:[%s2386_s8 + $0x10] sm:$0xff] }
 0x12e   : > { %v656_v23 = vpop.f32.mrb[2].mxu1 }
 0x12f   : > { %899 = vrot.lane.b32.xlu0 %v656_v23, %s1923_s21  ;;  %v1583_v24 = vpop.f32.mrb[3].mxu1  ;;  %1596 = vmatpush3.xpose.msk.msra.mxu1 %vm734_vm2, %v656_v23 }
 0x130   : > { %1600 = vmatprep.subr.mxu1 %v1922_v1  ;;  %v1268_v24 = vld [vmem:[%s2386_s8 + $0x18] sm:$0xff] }
 0x132   : > { %1598 = vmatmul.mubr.msk.f32.vlgmr.msra.gmra.mrb[6].mxu1 %vm734_vm2, %v582_v21 }
 0x133   : > { %897 = vrot.lane.b32.xlu0 %v582_v21, %s1923_s21  ;;  %1602 = vmatprep.mubr.msk.f32.mxu1 %vm1921_vm0, %v1922_v1  ;;  %v1266_v21 = vld [vmem:[%s2386_s8 + $0x8] sm:$0xff] }
 0x134   : > { %v1703_v23 = vpack.c.bf16 %v1266_v21, %v1265_v20 }
 0x136   : > { %v730_v25 = vpop.f32.mrb[4].mxu1 }
 0x137   : > { %v1594_v26 = vpop.f32.mrb[5].mxu1  ;;  %1601 = vmatpush3.msra.mxu1 %v730_v25 }
 0x138   : > { %1610 = vmatprep.subr.mxu1 %v1922_v1  ;;  %v1269_v26 = vld [vmem:[%s2386_s8 + $0x20] sm:$0xff] }
 0x1a1   : > { %v900_v27 = vpop.permute.xlu0 %899 }
 0x1a2   : > { %1606 = vmatpush3.xpose.msk.msra.mxu0 %vm734_vm2, %v900_v27  ;;  %v1270_v27 = vld [vmem:[%s2386_s8 + $0x28] sm:$0xff] }
 0x1a3   : > { %1690 = vmatprep.subr.bf16.mxu0 %v1920_v0 }
 0x1a5   : > { %v898_v28 = vpop.permute.xlu0 %897 }
 0x1a6   : > { %1608 = vmatmul.mubr.msk.f32.vlgmr.msra.gmra.mrb[0].mxu0 %vm734_vm2, %v898_v28  ;;  %v1709_v28 = vpack.c.bf16 %v1270_v27, %v1269_v26 }
 0x1a7   : > { %1623 = vmatprep.mubr.msk.f32.mxu0 %vm1921_vm0, %v1922_v1  ;;  %1692 = vmatpush3.bf16.msra.mxu0 %v1691_v57  ;;  %v1505_v57 = vld [vmem:[%s2387_s9] ss:$0 sm:$0xff] }
 0x1a8   : > { %1693 = vmatprep.subr.bf16.mxu0 %v1920_v0 }
 0x1ab   : > { %1695 = vmatpush3.bf16.msra.mxu0 %v1694_v59 }
 0x1ac   : > { %1702 = vmatprep.subr.bf16.mxu0 %v1920_v0 }
 0x205   : > { %v807_v29 = vpop.f32.mrb[6].mxu1 }
 0x206   : > { %v811_v30 = vmul.f32 4.0, %v807_v29  ;;  %v1599_v31 = vpop.f32.mrb[7].mxu1  ;;  %v1271_v29 = vld [vmem:[%s2386_s8 + $0x30] sm:$0xff] }
 0x208   : > { %v813_v32 = vsel %vm812_vm3, %v811_v30, -inf }
 0x209   : > { %814 = vmax.xlane.f32.xlu1 %v813_v32  ;;  %v1273_v32 = vld [vmem:[%s2386_s8 + $0x40] sm:$0xff] }
 0x279   : > { %v971_v33 = vpop.f32.mrb[0].mxu0 }
 0x27a   : > { %v975_v34 = vmul.f32 4.0, %v971_v33  ;;  %v1609_v35 = vpop.f32.mrb[1].mxu0  ;;  %v1274_v33 = vld [vmem:[%s2386_s8 + $0x48] sm:$0xff] }
 0x27b   : > { %v1275_v35 = vld [vmem:[%s2386_s8 + $0x50] sm:$0xff] }
 0x27c   : > { %v976_v36 = vsel %vm812_vm3, %v975_v34, -inf }
 0x27d   : > { %977 = vmax.xlane.f32.xlu1 %v976_v36  ;;  %v1276_v36 = vld [vmem:[%s2386_s8 + $0x58] sm:$0xff] }
 0x296   : > { %v815_v37 = vpop.xlane.xlu1 %814 }
 0x297   : > { %v816_v38 = vsub.f32 %v811_v30, %v815_v37  ;;  %v1272_v30 = vld [vmem:[%s2386_s8 + $0x38] sm:$0xff]  ;;  %v1718_v37 = vpack.c.bf16 %v1276_v36, %v1275_v35 }
 0x298   : > { %v1712_v31 = vpack.c.bf16 %v1272_v30, %v1271_v29 }
 0x299   : > { %v817_v39 = vmul.f32 1.442695, %v816_v38  ;;  %v1277_v38 = vld [vmem:[%s2386_s8 + $0x60] sm:$0xff] }
 0x29b   : > { %1793 = vpow2.f32 %v817_v39  ;;  %v1278_v39 = vld [vmem:[%s2386_s8 + $0x68] sm:$0xff] }
 0x2a5   : > { %v1794_v40 = vpop.eup %1793 }
 0x2a6   : > { %v819_v41 = vsel %vm812_vm3, %v1794_v40, 0.0 }
 0x2a7   : > { %820 = vadd.xlane.f32.xlu0 %v819_v41 }
 0x30a   : > { %v978_v42 = vpop.xlane.xlu1 %977 }
 0x30b   : > { %v979_v43 = vsub.f32 %v975_v34, %v978_v42  ;;  %v1715_v34 = vpack.c.bf16 %v1274_v33, %v1273_v32 }
 0x30d   : > { %v980_v44 = vmul.f32 1.442695, %v979_v43 }
 0x30f   : > { %1795 = vpow2.f32 %v980_v44 }
 0x319   : > { %v1796_v45 = vpop.eup %1795 }
 0x31a   : > { %v982_v46 = vsel %vm812_vm3, %v1796_v45, 0.0 }
 0x31b   : > { %983 = vadd.xlane.f32.xlu1 %v982_v46 }
 0x32c   : > { %988 = vrot.lane.b32.xlu1 %v730_v25, %s1923_s21  ;;  %v1706_v25 = vpack.c.bf16 %v1268_v24, %v1267_v22  ;;  %s1387_s21 = scalar_lea.sflag [#allocation4], %s2112_s29 }
 0x334   : > { %v821_v47 = vpop.xlane.xlu0 %820 }
 0x335   : > { %1797 = vrcp.f32 %v821_v47  ;;  %v1502_v47 = vld [vmem:[%s2389_s11] ss:$0 sm:$0xff] }
 0x33f   : > { %v1798_v48 = vpop.eup %1797 }
 0x340   : > { %v823_v49 = vmul.f32 %v1798_v48, %v1794_v40  ;;  %v1721_v40 = vpack.c.bf16 %v1278_v39, %v1277_v38 }
 0x342   : > { %1603 = vmatmul.mubr.msk.f32.vlgmr.msra.gmra.mrb[8].mxu1 %vm812_vm3, %v823_v49 }
 0x343   : > { %1612 = vmatprep.mubr.msk.f32.mxu1 %vm1921_vm0, %v1922_v1 }
 0x3a8   : > { %v984_v50 = vpop.xlane.xlu1 %983 }
 0x3a9   : > { %1799 = vrcp.f32 %v984_v50  ;;  %v1280_v50 = vld [vmem:[%s2386_s8 + $0x78] sm:$0xff] }
 0x3ac   : > { %v989_v51 = vpop.permute.xlu1 %988 }
 0x3ad   : > { %1611 = vmatpush3.msra.mxu1 %v989_v51 }
 0x3ae   : > { %1696 = vmatprep.subr.bf16.mxu1 %v1920_v0 }
 0x3b3   : > { %v1800_v52 = vpop.eup %1799 }
 0x3b4   : > { %v986_v53 = vmul.f32 %v1800_v52, %v1796_v45  ;;  %v1501_v45 = vld [vmem:[%s2388_s10] ss:$0 sm:$0xff] }
 0x3b5   : > { %v1503_v52 = vld [vmem:[%s2385_s7] ss:$0 sm:$0xff] }
 0x3b6   : > { %1613 = vmatmul.mubr.msk.f32.vlgmr.msra.gmra.mrb[10].mxu1 %vm812_vm3, %v986_v53 }
 0x3b7   : > { %1634 = vmatprep.mubr.msk.f32.mxu1 %vm1921_vm0, %v1922_v1 }
 0x415   : > { %v893_v60 = vpop.f32.mrb[8].mxu1 }
 0x416   : > { %v1604_v61 = vpop.f32.mrb[9].mxu1 }
 0x489   : > { %v1060_v62 = vpop.f32.mrb[10].mxu1 }
 0x48a   : > { %1065 = vrot.lane.b32.xlu1 %v1060_v62, %s1924_s19  ;;  %v1614_v63 = vpop.f32.mrb[11].mxu1 }
 0x4fc   : > { %v1066_v2 = vpop.permute.xlu1 %1065 }
 0x4fd   : > { %v1068_v3 = vsel %vm734_vm2, %v893_v60, %v1066_v2 }
 0x4fe   : > { %1624 = vmatmul.mubr.msk.f32.vlgmr.msra.gmra.mrb[2].mxu0 %vm512_vm1, %v1068_v3 }
 0x4ff   : > { %1669 = vmatprep.mubr.msk.f32.mxu0 %vm1921_vm0, %v1922_v1  ;;  %v1181_v1 = vld [vmem:[%s2384_s6] sm:$0xff]  ;;  %1704 = vmatpush3.bf16.msra.mxu0 %v1703_v23 }
 0x500   : > { %v1697_v17 = vpack.c.bf16 %v1182_v16, %v1181_v1  ;;  %1705 = vmatprep.subr.bf16.mxu0 %v1920_v0 }
 0x502   : > { %1698 = vmatpush3.bf16.msra.mxu1 %v1697_v17 }
 0x503   : > { %1699 = vmatprep.subr.bf16.mxu1 %v1920_v0  ;;  %1707 = vmatpush3.bf16.msra.mxu0 %v1706_v25 }
 0x504   : > { %1708 = vmatprep.subr.bf16.mxu0 %v1920_v0 }
 0x507   : > { %1710 = vmatpush3.bf16.msra.mxu0 %v1709_v28 }
 0x508   : > { %1711 = vmatprep.subr.bf16.mxu0 %v1920_v0 }
 0x50b   : > { %1713 = vmatpush3.bf16.msra.mxu0 %v1712_v31 }
 0x50c   : > { %1714 = vmatprep.subr.bf16.mxu0 %v1920_v0 }
 0x50f   : > { %1716 = vmatpush3.bf16.msra.mxu0 %v1715_v34 }
 0x510   : > { %1717 = vmatprep.subr.bf16.mxu0 %v1920_v0 }
 0x513   : > { %1719 = vmatpush3.bf16.msra.mxu0 %v1718_v37 }
 0x514   : > { %1720 = vmatprep.subr.bf16.mxu0 %v1920_v0 }
 0x517   : > { %1722 = vmatpush3.bf16.msra.mxu0 %v1721_v40 }
 0x518   : > { %1723 = vmatprep.subr.bf16.mxu0 %v1920_v0  ;;  %v1279_v0 = vld [vmem:[%s2386_s8 + $0x70] sm:$0xff] }
 0x519   : > { %v1724_v51 = vpack.c.bf16 %v1280_v50, %v1279_v0 }
 0x51b   : > { %1725 = vmatpush3.bf16.msra.mxu0 %v1724_v51 }
 0x5d1   : > { %v1148_v5 = vpop.f32.mrb[2].mxu0 }
 0x5d2   : > { %v1149_v6 = vadd.f32 %v1499_v4, %v1148_v5  ;;  %v1625_v7 = vpop.f32.mrb[3].mxu0 }
 0x5d4   : > { %v1152_v8 = vadd.f32 %v1149_v6, %v2147_v10  ;;  %v1183_v10 = vld [vmem:[%s2384_s6 + $0x10] sm:$0xff] }
 0x5d5   : > { %v1700_v19 = vpack.c.bf16 %v1184_v18, %v1183_v10 }
 0x5d6   : > { %v1153_v9 = vsel %vm512_vm1, %v1152_v8, 0.0 }
 0x5d7   : > { %1154 = vadd.xlane.f32.xlu1 %v1153_v9  ;;  %1701 = vmatpush3.bf16.msra.mxu1 %v1700_v19 }
 0x664   : > { %v1155_v11 = vpop.xlane.xlu1 %1154 }
 0x665   : > { %v1157_v12 = vmul.f32 0.03125, %v1155_v11  ;;  %v1506_v11 = vld [vmem:[%s2390_s12] ss:$0 sm:$0xff] }
 0x667   : > { %v1158_v13 = vsub.f32 %v1152_v8, %v1157_v12 }
 0x669   : > { %v1159_v14 = vmul.f32 %v1158_v13, %v1158_v13 }
 0x66b   : > { %v1160_v15 = vsel %vm512_vm1, %v1159_v14, 0.0 }
 0x66c   : > { %1161 = vadd.xlane.f32.xlu0 %v1160_v15 }
 0x6f9   : > { %v1162_v41 = vpop.xlane.xlu0 %1161 }
 0x6fa   : > { %v1163_v42 = vmul.f32 0.03125, %v1162_v41 }
 0x6fc   : > { %v1164_v43 = vadd.f32 1e-05, %v1163_v42 }
 0x6fe   : > { %1801 = vrsqrt.f32 %v1164_v43 }
 0x708   : > { %v1802_v44 = vpop.eup %1801 }
 0x709   : > { %v1166_v46 = vmul.f32 %v1802_v44, %v1158_v13  ;;  %v1507_v13 = vld [vmem:[%s2415_s20] ss:$0 sm:$0xff] }
 0x70b   : > { %v1173_v48 = vmul.f32 %v1501_v45, %v1166_v46 }
 0x70d   : > { %v1180_v49 = vadd.f32 %v1502_v47, %v1173_v48 }
 0x70f   : > { %1635 = vmatmul.mubr.msk.f32.vlgmr.msra.gmra.mrb[12].mxu1 %vm512_vm1, %v1180_v49 }
 0x7e2   : > { %v1260_v53 = vpop.f32.mrb[12].mxu1 }
 0x7e3   : > { %v1261_v54 = vadd.f32 %v1503_v52, %v1260_v53  ;;  %v1636_v55 = vpop.f32.mrb[13].mxu1 }
 0x7e5   : > { %v1264_v56 = vmax.f32 %v1261_v54, 0.0 }
 0x7e7   : > { %1670 = vmatmul.mubr.f32.vlgmr.msra.gmra.mrb[4].mxu0 %v1264_v56 }
 0x8ba   : > { %v1353_v58 = vpop.f32.mrb[4].mxu0 }
 0x8bb   : > { %v1354_v59 = vadd.f32 %v1505_v57, %v1353_v58  ;;  %v1671_v60 = vpop.f32.mrb[5].mxu0 }
 0x8bd   : > { %v1357_v61 = vadd.f32 %v1354_v59, %v1180_v49 }
 0x8bf   : > { %v1358_v62 = vsel %vm512_vm1, %v1357_v61, 0.0 }
 0x8c0   : > { %1359 = vadd.xlane.f32.xlu0 %v1358_v62 }
 0x94d   : > { %v1360_v63 = vpop.xlane.xlu0 %1359 }
 0x94e   : > { %v1361_v2 = vmul.f32 0.03125, %v1360_v63 }
 0x950   : > { %v1362_v3 = vsub.f32 %v1357_v61, %v1361_v2 }
 0x952   : > { %v1363_v4 = vmul.f32 %v1362_v3, %v1362_v3 }
 0x954   : > { %v1364_v5 = vsel %vm512_vm1, %v1363_v4, 0.0 }
 0x955   : > { %1365 = vadd.xlane.f32.xlu0 %v1364_v5 }
 0x9e2   : > { %v1366_v6 = vpop.xlane.xlu0 %1365 }
 0x9e3   : > { %v1367_v7 = vmul.f32 0.03125, %v1366_v6 }
 0x9e5   : > { %v1368_v8 = vadd.f32 1e-05, %v1367_v7 }
 0x9e7   : > { %1803 = vrsqrt.f32 %v1368_v8 }
 0x9f1   : > { %v1804_v9 = vpop.eup %1803 }
 0x9f2   : > { %v1370_v12 = vmul.f32 %v1804_v9, %v1362_v3 }
 0x9f4   : > { %v1377_v14 = vmul.f32 %v1506_v11, %v1370_v12 }
 0x9f6   : > { %v1384_v15 = vadd.f32 %v1507_v13, %v1377_v14 }
 0x9f8   : > { %1385 = vst.msk [vmem:[%s499_s22] sm:$0xff] %vm512_vm1, %v1384_v15 }
 0x9f9   : > { %1848 = shalt.err (!%p1845_p6)
}
 0x9fa   : > { %s1849_s29 = scalar_lea.hbm %s2328_s1, 128  ;;  %s1853_s13 = scalar_lea.hbm %s2416_s0, 256 }
 0x9fb   : > { %p1850_p4 = scmp.ne.s32.totalorder %s2328_s1, %s1849_s29  ;;  %p1854_p1 = scmp.lt.u32.totalorder %s2328_s1, %s2416_s0 }
 0x9fc   : > { %p1855_p2 = scmp.lt.u32.totalorder %s1853_s13, %s1849_s29  ;;  %p1857_p8 = scmp.lt.u32.totalorder %s1849_s29, %s2328_s1 }
 0x9fd   : > { %p1851_p10 = pnand %p1850_p4, %p2417_p9 }
 0x9fe   : > { %p1856_p5 = por %p1855_p2, %p1854_p1 }
 0x9ff   : > { %p1852_p12 = pneg %p1851_p10 }
 0xa00   : > { %p1858_p11 = por %p1857_p8, %p1856_p5 }
 0xa02   : > { %p1859_p0 = pnand %p1858_p11, %p1852_p12 }
 0xa04   : > { %1862 = shalt.err (!%p1859_p0)
}
 0xa05   : > { %1728 = dma.vmem_to_hbm [thread:$0]  (%p2417_p9), %s2330_s14, 128, %s2328_s1, %s1387_s21  }
 0xa06 PF: > { %s2418_s19 = sld [smem:[#allocation8_spill]]  ;;  %p2419_p7 = scmp.ne.s32.totalorder %s2409_s28, 0 }
 0xa07   : > { %p2420_p13 = scmp.ge.s32.totalorder %s1917_s18, 2 }
 0xa09   : > { %p1735_p3 = pnand %p2420_p13, %p2419_p7 }
 0xa0c   : > { %s1413_s24 = sand.u32 1, %s2418_s19  }
 0xa0d   : > { %s1414_s16 = scalar_lea.sflag [#allocation4], %s1413_s24 }
 0xa0e   : > { %1892 = dma.done.wait (!%p1735_p3), %s1414_s16, 128  }
 0xa0f   : > { %1894 = vsyncadd (!%p1735_p3), %s1414_s16, 4294967168  ;;  %s30_s18 = sadd.s32 1, %s1917_s18   ;;  %s2421_s26 = sld [smem:[#allocation11_spill]] }
 0xa10   : > { %p27_p6 = scmp.ge.s32.totalorder %s30_s18, 4   ;;  %s2422_s16 = sld [smem:[#allocation9_spill]] }
 0xa11   : > { %s2423_s17 = sld [smem:[#allocation10_spill]]  ;;  %s2424_s29 = smov %s1901_s30 }
 0xa12   : > { %s2425_s30 = smov %s1905_s15  ;;  %29 = sbr.rel (!%p27_p6) target bundleno = 11 (0xb), region = 121 }
 0xa15   : > { %s2426_s15 = smov %s2421_s26 }
 0xa19   :  { %1419 = vsyncpa [#allocation3], 1 }
 0xa1a   :  { %1421 = vsyncpa [#allocation3 + $0x1], 1 }
 0xa1b   :  { %1422 = vsyncpa [#allocation4], 1 }
 0xa1c   :  { %1424 = vsyncpa [#allocation4 + $0x1], 1 }

</bundles_post_ra>
